<compile_context>
chip_gen: v7x
topology: tpu7x:2x2x1
jax: 0.10.0
libtpu: 0.0.40
codegen_flags: <defaults>
</compile_context>

<pallas_src>
import math
import jax
import jax.numpy as jnp
from jax import lax
from jax.experimental import pallas as pl
from jax.experimental.pallas import tpu as pltpu

# Small config consistent with the module (config.model.gpt2[...]):
HIDDEN = 32          # hidden_size
HEADS = 4            # heads
LAYERS = 2           # layers
FF = 4 * HIDDEN      # dim_feedforward
SEQ = 8
BATCH = 2
HEAD_DIM = HIDDEN // HEADS
NEG = -1e9           # finite stand-in for -inf mask entries
EPS = 1e-5           # nn.LayerNorm default eps
INV_SQRT2 = 0.7071067811865476


def _layernorm(x, g, b):
    mu = jnp.mean(x, axis=-1, keepdims=True)
    var = jnp.mean((x - mu) ** 2, axis=-1, keepdims=True)
    return (x - mu) * lax.rsqrt(var + EPS) * g + b


def _decoder_kernel(x_ref, mask_ref,
                    wqkv_ref, bqkv_ref, wout_ref, bout_ref,
                    g1_ref, b1_ref, wff1_ref, bff1_ref, wff2_ref, bff2_ref,
                    g2_ref, b2_ref, out_ref):
    """Full DecoderOnly forward: all layers, whole batch, one kernel invocation."""
    B, S, D = x_ref.shape
    N = B * S

    # (B, S, D) -> (B*S, D): lane dim unchanged, cheap collapse of major dims.
    x2 = x_ref[...].reshape(N, D)
    # (HEADS*B, S, S) additive causal + key-padding mask, pre-tiled per head.
    mask_hb = mask_ref[...]
    scale = 1.0 / math.sqrt(HEAD_DIM)

    for l in range(LAYERS):                  # statically unrolled layer loop
        wqkv = wqkv_ref[l]; bqkv = bqkv_ref[l]
        wout = wout_ref[l]; bout = bout_ref[l]
        g1 = g1_ref[l]; be1 = b1_ref[l]
        wff1 = wff1_ref[l]; bff1 = bff1_ref[l]
        wff2 = wff2_ref[l]; bff2 = bff2_ref[l]
        g2 = g2_ref[l]; be2 = b2_ref[l]

        # ---------------- self-attention ----------------
        qkv = jnp.dot(x2, wqkv, preferred_element_type=jnp.float32) + bqkv   # (N, 3D)
        q3 = (qkv[:, :D] * scale).reshape(B, S, D)
        k3 = qkv[:, D:2 * D].reshape(B, S, D)
        v3 = qkv[:, 2 * D:].reshape(B, S, D)

        # Per-head scores, stacked along the major axis -> one softmax for all heads.
        score_blocks = []
        for h in range(HEADS):
            lo, hi = h * HEAD_DIM, (h + 1) * HEAD_DIM
            score_blocks.append(
                jnp.einsum('bqd,bkd->bqk', q3[:, :, lo:hi], k3[:, :, lo:hi],
                           preferred_element_type=jnp.float32))              # (B,S,S)
        s_all = jnp.concatenate(score_blocks, axis=0) + mask_hb              # (H*B,S,S)

        # Single numerically-stable softmax over the last axis for every head/batch.
        s_all = s_all - jnp.max(s_all, axis=-1, keepdims=True)
        p_all = jnp.exp(s_all)
        # EUP approximate reciprocal instead of a VALU divide.
        p_all = p_all * pl.reciprocal(jnp.sum(p_all, axis=-1, keepdims=True),
                                      approx=True)

        head_outs = []
        for h in range(HEADS):
            lo, hi = h * HEAD_DIM, (h + 1) * HEAD_DIM
            p_h = p_all[h * B:(h + 1) * B]                                    # (B,S,S)
            head_outs.append(jnp.einsum('bqk,bkd->bqd', p_h, v3[:, :, lo:hi],
                                        preferred_element_type=jnp.float32))  # (B,S,Dh)

        # concat heads (contiguous along lanes) -> single output projection matmul
        o = jnp.concatenate(head_outs, axis=-1).reshape(N, D)
        attn = jnp.dot(o, wout, preferred_element_type=jnp.float32) + bout

        # residual + LayerNorm1 (post-norm, norm_first=False)
        y = _layernorm(x2 + attn, g1, be1)

        # ---------------- feed forward (exact erf GELU) ----------------
        h1 = jnp.dot(y, wff1, preferred_element_type=jnp.float32) + bff1
        h1 = 0.5 * h1 * (1.0 + lax.erf(h1 * INV_SQRT2))
        h2 = jnp.dot(h1, wff2, preferred_element_type=jnp.float32) + bff2

        # residual + LayerNorm2
        x2 = _layernorm(y + h2, g2, be2)

    out_ref[...] = x2.reshape(B, S, D)


def decoder_only_forward(input_ids, padding_mask, layer_params):
    """input_ids: (B, S, D) float embeddings; padding_mask: (B, S) bool (True = pad)."""
    x = input_ids.astype(jnp.float32)
    B, S, D = x.shape

    # Build the additive mask ONCE in the wrapper (causal + key-padding),
    # pre-tiled per head so the kernel does a single add per layer.
    row = jnp.arange(S)[:, None]
    col = jnp.arange(S)[None, :]
    causal = jnp.where(col <= row, 0.0, NEG).astype(jnp.float32)      # (S, S)
    pad_add = jnp.where(padding_mask, NEG, 0.0).astype(jnp.float32)   # (B, S)
    # NOTE: where causal and padding masks overlap the entries stack to -2e9;
    # intentional and still safely finite for the max-subtracted softmax.
    mask = causal[None, :, :] + pad_add[:, None, :]                   # (B, S, S)
    mask_hb = jnp.tile(mask, (HEADS, 1, 1))                           # (HEADS*B, S, S)

    # Stack per-layer params into (LAYERS, ...) arrays so the whole model is a
    # single set of VMEM-resident operands for one pallas_call.
    stacked = [jnp.stack([p[i] for p in layer_params]) for i in range(12)]

    n_in = 2 + len(stacked)
    return pl.pallas_call(
        _decoder_kernel,
        out_shape=jax.ShapeDtypeStruct((B, S, D), jnp.float32),
        in_specs=[pl.BlockSpec(memory_space=pltpu.MemorySpace.VMEM)
                  for _ in range(n_in)],
        out_specs=pl.BlockSpec(memory_space=pltpu.MemorySpace.VMEM),
    )(x, mask_hb, *stacked)


# ------------------------- pure-JAX reference -------------------------
def _layernorm_ref(x, g, b):
    mu = jnp.mean(x, axis=-1, keepdims=True)
    var = jnp.mean((x - mu) ** 2, axis=-1, keepdims=True)
    return (x - mu) * lax.rsqrt(var + EPS) * g + b


def ref_forward(input_ids, padding_mask, layer_params):
    x = input_ids.astype(jnp.float32)
    B, S, D = x.shape
    row = jnp.arange(S)[:, None]
    col = jnp.arange(S)[None, :]
    causal = jnp.where(col <= row, 0.0, NEG)
    pad_add = jnp.where(padding_mask, NEG, 0.0)[:, None, None, :]
    mask = causal[None, None, :, :] + pad_add
    scale = 1.0 / math.sqrt(HEAD_DIM)
    for (wqkv, bqkv, wout, bout, g1, b1, wff1, bff1, wff2, bff2, g2, b2) in layer_params:
        qkv = x @ wqkv + bqkv
        q, k, v = jnp.split(qkv, 3, axis=-1)

        def heads(t):
            return t.reshape(B, S, HEADS, HEAD_DIM).transpose(0, 2, 1, 3)

        qh, kh, vh = heads(q) * scale, heads(k), heads(v)
        s = jnp.einsum('bhqd,bhkd->bhqk', qh, kh) + mask
        p = jax.nn.softmax(s, axis=-1)
        o = jnp.einsum('bhqk,bhkd->bhqd', p, vh).transpose(0, 2, 1, 3).reshape(B, S, D)
        o = o @ wout + bout
        y = _layernorm_ref(x + o, g1, b1)
        h1 = y @ wff1 + bff1
        h1 = 0.5 * h1 * (1.0 + lax.erf(h1 * INV_SQRT2))
        x = _layernorm_ref(y + (h1 @ wff2 + bff2), g2, b2)
    return x


# ------------------------- deterministic params -------------------------
def init_params(key):
    layers = []
    for l in range(LAYERS):
        ks = jax.random.split(jax.random.fold_in(key, l), 6)
        wqkv = 0.05 * jax.random.normal(ks[0], (HIDDEN, 3 * HIDDEN), jnp.float32)
        bqkv = 0.01 * jax.random.normal(ks[1], (1, 3 * HIDDEN), jnp.float32)
        wout = 0.05 * jax.random.normal(ks[2], (HIDDEN, HIDDEN), jnp.float32)
        bout = jnp.zeros((1, HIDDEN), jnp.float32)
        g1 = jnp.ones((1, HIDDEN), jnp.float32)
        b1 = jnp.zeros((1, HIDDEN), jnp.float32)
        wff1 = 0.05 * jax.random.normal(ks[3], (HIDDEN, FF), jnp.float32)
        bff1 = 0.01 * jax.random.normal(ks[4], (1, FF), jnp.float32)
        wff2 = 0.05 * jax.random.normal(ks[5], (FF, HIDDEN), jnp.float32)
        bff2 = jnp.zeros((1, HIDDEN), jnp.float32)
        g2 = jnp.ones((1, HIDDEN), jnp.float32)
        b2 = jnp.zeros((1, HIDDEN), jnp.float32)
        layers.append((wqkv, bqkv, wout, bout, g1, b1, wff1, bff1, wff2, bff2, g2, b2))
    return layers


if __name__ == "__main__":
    key = jax.random.PRNGKey(0)
    k_x, k_p = jax.random.split(key)
    # "input_ids" in the PyTorch module is already a float embedding tensor (B, S, D)
    input_ids = jax.random.normal(k_x, (BATCH, SEQ, HIDDEN), jnp.float32)
    # key-padding mask: True = padded position (last two tokens of batch element 1)
    padding_mask = jnp.zeros((BATCH, SEQ), jnp.bool_).at[1, SEQ - 2:].set(True)

    params = init_params(jax.random.PRNGKey(42))

    out = decoder_only_forward(input_ids, padding_mask, params)
    out = jax.block_until_ready(out)

    ref = ref_forward(input_ids, padding_mask, params)
    max_err = float(jnp.max(jnp.abs(out - ref)))
    assert out.shape == (BATCH, SEQ, HIDDEN)
    assert max_err < 2e-3, f"mismatch vs reference: {max_err}"
    print("KERNEL_OK")
</pallas_src>

<mosaic_0001>
module attributes {stable_mosaic.version = 11 : i64} {
  func.func @_decoder_kernel(%arg0: memref<2x8x32xf32, #tpu.memory_space<vmem>>, %arg1: memref<8x8x8xf32, #tpu.memory_space<vmem>>, %arg2: memref<2x32x96xf32, #tpu.memory_space<vmem>>, %arg3: memref<2x1x96xf32, #tpu.memory_space<vmem>>, %arg4: memref<2x32x32xf32, #tpu.memory_space<vmem>>, %arg5: memref<2x1x32xf32, #tpu.memory_space<vmem>>, %arg6: memref<2x1x32xf32, #tpu.memory_space<vmem>>, %arg7: memref<2x1x32xf32, #tpu.memory_space<vmem>>, %arg8: memref<2x32x128xf32, #tpu.memory_space<vmem>>, %arg9: memref<2x1x128xf32, #tpu.memory_space<vmem>>, %arg10: memref<2x128x32xf32, #tpu.memory_space<vmem>>, %arg11: memref<2x1x32xf32, #tpu.memory_space<vmem>>, %arg12: memref<2x1x32xf32, #tpu.memory_space<vmem>>, %arg13: memref<2x1x32xf32, #tpu.memory_space<vmem>>, %arg14: memref<2x8x32xf32, #tpu.memory_space<vmem>>) attributes {dimension_semantics = [], scalar_prefetch = 0 : i64, scratch_operands = 0 : i64, tpu.core_type = #tpu.core_type<tc>} {
    %c0 = arith.constant 0 : index
    %c0_0 = arith.constant 0 : index
    %c0_1 = arith.constant 0 : index
    %0 = vector.load %arg0[%c0, %c0_0, %c0_1] : memref<2x8x32xf32, #tpu.memory_space<vmem>>, vector<2x8x32xf32>
    %1 = vector.shape_cast %0 : vector<2x8x32xf32> to vector<16x32xf32>
    %c0_2 = arith.constant 0 : index
    %c0_3 = arith.constant 0 : index
    %c0_4 = arith.constant 0 : index
    %2 = vector.load %arg1[%c0_2, %c0_3, %c0_4] : memref<8x8x8xf32, #tpu.memory_space<vmem>>, vector<8x8x8xf32>
    %c0_5 = arith.constant 0 : index
    %c0_6 = arith.constant 0 : index
    %c0_7 = arith.constant 0 : index
    %3 = vector.load %arg2[%c0_5, %c0_6, %c0_7] : memref<2x32x96xf32, #tpu.memory_space<vmem>>, vector<1x32x96xf32>
    %4 = vector.shape_cast %3 : vector<1x32x96xf32> to vector<32x96xf32>
    %c0_8 = arith.constant 0 : index
    %c0_9 = arith.constant 0 : index
    %c0_10 = arith.constant 0 : index
    %5 = vector.load %arg3[%c0_8, %c0_9, %c0_10] : memref<2x1x96xf32, #tpu.memory_space<vmem>>, vector<1x1x96xf32>
    %6 = vector.shape_cast %5 : vector<1x1x96xf32> to vector<1x96xf32>
    %c0_11 = arith.constant 0 : index
    %c0_12 = arith.constant 0 : index
    %c0_13 = arith.constant 0 : index
    %7 = vector.load %arg4[%c0_11, %c0_12, %c0_13] : memref<2x32x32xf32, #tpu.memory_space<vmem>>, vector<1x32x32xf32>
    %8 = vector.shape_cast %7 : vector<1x32x32xf32> to vector<32x32xf32>
    %c0_14 = arith.constant 0 : index
    %c0_15 = arith.constant 0 : index
    %c0_16 = arith.constant 0 : index
    %9 = vector.load %arg5[%c0_14, %c0_15, %c0_16] : memref<2x1x32xf32, #tpu.memory_space<vmem>>, vector<1x1x32xf32>
    %10 = vector.shape_cast %9 : vector<1x1x32xf32> to vector<1x32xf32>
    %c0_17 = arith.constant 0 : index
    %c0_18 = arith.constant 0 : index
    %c0_19 = arith.constant 0 : index
    %11 = vector.load %arg6[%c0_17, %c0_18, %c0_19] : memref<2x1x32xf32, #tpu.memory_space<vmem>>, vector<1x1x32xf32>
    %12 = vector.shape_cast %11 : vector<1x1x32xf32> to vector<1x32xf32>
    %c0_20 = arith.constant 0 : index
    %c0_21 = arith.constant 0 : index
    %c0_22 = arith.constant 0 : index
    %13 = vector.load %arg7[%c0_20, %c0_21, %c0_22] : memref<2x1x32xf32, #tpu.memory_space<vmem>>, vector<1x1x32xf32>
    %14 = vector.shape_cast %13 : vector<1x1x32xf32> to vector<1x32xf32>
    %c0_23 = arith.constant 0 : index
    %c0_24 = arith.constant 0 : index
    %c0_25 = arith.constant 0 : index
    %15 = vector.load %arg8[%c0_23, %c0_24, %c0_25] : memref<2x32x128xf32, #tpu.memory_space<vmem>>, vector<1x32x128xf32>
    %16 = vector.shape_cast %15 : vector<1x32x128xf32> to vector<32x128xf32>
    %c0_26 = arith.constant 0 : index
    %c0_27 = arith.constant 0 : index
    %c0_28 = arith.constant 0 : index
    %17 = vector.load %arg9[%c0_26, %c0_27, %c0_28] : memref<2x1x128xf32, #tpu.memory_space<vmem>>, vector<1x1x128xf32>
    %18 = vector.shape_cast %17 : vector<1x1x128xf32> to vector<1x128xf32>
    %c0_29 = arith.constant 0 : index
    %c0_30 = arith.constant 0 : index
    %c0_31 = arith.constant 0 : index
    %19 = vector.load %arg10[%c0_29, %c0_30, %c0_31] : memref<2x128x32xf32, #tpu.memory_space<vmem>>, vector<1x128x32xf32>
    %20 = vector.shape_cast %19 : vector<1x128x32xf32> to vector<128x32xf32>
    %c0_32 = arith.constant 0 : index
    %c0_33 = arith.constant 0 : index
    %c0_34 = arith.constant 0 : index
    %21 = vector.load %arg11[%c0_32, %c0_33, %c0_34] : memref<2x1x32xf32, #tpu.memory_space<vmem>>, vector<1x1x32xf32>
    %22 = vector.shape_cast %21 : vector<1x1x32xf32> to vector<1x32xf32>
    %c0_35 = arith.constant 0 : index
    %c0_36 = arith.constant 0 : index
    %c0_37 = arith.constant 0 : index
    %23 = vector.load %arg12[%c0_35, %c0_36, %c0_37] : memref<2x1x32xf32, #tpu.memory_space<vmem>>, vector<1x1x32xf32>
    %24 = vector.shape_cast %23 : vector<1x1x32xf32> to vector<1x32xf32>
    %c0_38 = arith.constant 0 : index
    %c0_39 = arith.constant 0 : index
    %c0_40 = arith.constant 0 : index
    %25 = vector.load %arg13[%c0_38, %c0_39, %c0_40] : memref<2x1x32xf32, #tpu.memory_space<vmem>>, vector<1x1x32xf32>
    %26 = vector.shape_cast %25 : vector<1x1x32xf32> to vector<1x32xf32>
    %cst = arith.constant dense<0.000000e+00> : vector<16x96xf32>
    %27 = tpu.matmul %1, %4, %cst {dimension_numbers = #tpu.dot_dimension_numbers<[1], [0], [0], [1], [0, 0, 1, 1], [], []>} : vector<16x32xf32>, vector<32x96xf32>, vector<16x96xf32> -> vector<16x96xf32>
    %28 = vector.broadcast %6 : vector<1x96xf32> to vector<16x96xf32>
    %29 = arith.addf %27, %28 : vector<16x96xf32>
    %30 = vector.extract_strided_slice %29 {offsets = [0, 0], sizes = [16, 32], strides = [1, 1]} : vector<16x96xf32> to vector<16x32xf32>
    %cst_41 = arith.constant 0.353553385 : f32
    %31 = vector.broadcast %cst_41 : f32 to vector<16x32xf32>
    %32 = arith.mulf %30, %31 : vector<16x32xf32>
    %33 = vector.shape_cast %32 : vector<16x32xf32> to vector<2x8x32xf32>
    %34 = vector.extract_strided_slice %29 {offsets = [0, 32], sizes = [16, 32], strides = [1, 1]} : vector<16x96xf32> to vector<16x32xf32>
    %35 = vector.shape_cast %34 : vector<16x32xf32> to vector<2x8x32xf32>
    %36 = vector.extract_strided_slice %29 {offsets = [0, 64], sizes = [16, 32], strides = [1, 1]} : vector<16x96xf32> to vector<16x32xf32>
    %37 = vector.shape_cast %36 : vector<16x32xf32> to vector<2x8x32xf32>
    %38 = vector.extract_strided_slice %33 {offsets = [0, 0, 0], sizes = [2, 8, 8], strides = [1, 1, 1]} : vector<2x8x32xf32> to vector<2x8x8xf32>
    %39 = vector.extract_strided_slice %35 {offsets = [0, 0, 0], sizes = [2, 8, 8], strides = [1, 1, 1]} : vector<2x8x32xf32> to vector<2x8x8xf32>
    "tpu.trace_start"() <{level = 10 : i32, message = "bqd,bkd->bqk"}> : () -> ()
    %cst_42 = arith.constant dense<0.000000e+00> : vector<2x8x8xf32>
    %40 = tpu.matmul %38, %39, %cst_42 {dimension_numbers = #tpu.dot_dimension_numbers<[2], [2], [1], [1], [0, 0, 0, 1, 1, 1], [0], [0]>} : vector<2x8x8xf32>, vector<2x8x8xf32>, vector<2x8x8xf32> -> vector<2x8x8xf32>
    "tpu.trace_stop"() : () -> ()
    %41 = vector.extract_strided_slice %33 {offsets = [0, 0, 8], sizes = [2, 8, 8], strides = [1, 1, 1]} : vector<2x8x32xf32> to vector<2x8x8xf32>
    %42 = vector.extract_strided_slice %35 {offsets = [0, 0, 8], sizes = [2, 8, 8], strides = [1, 1, 1]} : vector<2x8x32xf32> to vector<2x8x8xf32>
    "tpu.trace_start"() <{level = 10 : i32, message = "bqd,bkd->bqk"}> : () -> ()
    %cst_43 = arith.constant dense<0.000000e+00> : vector<2x8x8xf32>
    %43 = tpu.matmul %41, %42, %cst_43 {dimension_numbers = #tpu.dot_dimension_numbers<[2], [2], [1], [1], [0, 0, 0, 1, 1, 1], [0], [0]>} : vector<2x8x8xf32>, vector<2x8x8xf32>, vector<2x8x8xf32> -> vector<2x8x8xf32>
    "tpu.trace_stop"() : () -> ()
    %44 = vector.extract_strided_slice %33 {offsets = [0, 0, 16], sizes = [2, 8, 8], strides = [1, 1, 1]} : vector<2x8x32xf32> to vector<2x8x8xf32>
    %45 = vector.extract_strided_slice %35 {offsets = [0, 0, 16], sizes = [2, 8, 8], strides = [1, 1, 1]} : vector<2x8x32xf32> to vector<2x8x8xf32>
    "tpu.trace_start"() <{level = 10 : i32, message = "bqd,bkd->bqk"}> : () -> ()
    %cst_44 = arith.constant dense<0.000000e+00> : vector<2x8x8xf32>
    %46 = tpu.matmul %44, %45, %cst_44 {dimension_numbers = #tpu.dot_dimension_numbers<[2], [2], [1], [1], [0, 0, 0, 1, 1, 1], [0], [0]>} : vector<2x8x8xf32>, vector<2x8x8xf32>, vector<2x8x8xf32> -> vector<2x8x8xf32>
    "tpu.trace_stop"() : () -> ()
    %47 = vector.extract_strided_slice %33 {offsets = [0, 0, 24], sizes = [2, 8, 8], strides = [1, 1, 1]} : vector<2x8x32xf32> to vector<2x8x8xf32>
    %48 = vector.extract_strided_slice %35 {offsets = [0, 0, 24], sizes = [2, 8, 8], strides = [1, 1, 1]} : vector<2x8x32xf32> to vector<2x8x8xf32>
    "tpu.trace_start"() <{level = 10 : i32, message = "bqd,bkd->bqk"}> : () -> ()
    %cst_45 = arith.constant dense<0.000000e+00> : vector<2x8x8xf32>
    %49 = tpu.matmul %47, %48, %cst_45 {dimension_numbers = #tpu.dot_dimension_numbers<[2], [2], [1], [1], [0, 0, 0, 1, 1, 1], [0], [0]>} : vector<2x8x8xf32>, vector<2x8x8xf32>, vector<2x8x8xf32> -> vector<2x8x8xf32>
    "tpu.trace_stop"() : () -> ()
    %50 = tpu.concatenate %40, %43, %46, %49 in 0 : vector<2x8x8xf32>, vector<2x8x8xf32>, vector<2x8x8xf32>, vector<2x8x8xf32> -> vector<8x8x8xf32>
    %51 = arith.addf %50, %2 : vector<8x8x8xf32>
    %cst_46 = arith.constant dense<0xFF800000> : vector<8x8xf32>
    %52 = vector.multi_reduction <maximumf>, %51, %cst_46 [2] : vector<8x8x8xf32> to vector<8x8xf32>
    %53 = vector.shape_cast %52 : vector<8x8xf32> to vector<8x8x1xf32>
    %54 = vector.broadcast %53 : vector<8x8x1xf32> to vector<8x8x8xf32>
    %55 = arith.subf %51, %54 : vector<8x8x8xf32>
    %56 = math.exp %55 : vector<8x8x8xf32>
    %cst_47 = arith.constant dense<0.000000e+00> : vector<8x8xf32>
    %57 = vector.multi_reduction <add>, %56, %cst_47 [2] : vector<8x8x8xf32> to vector<8x8xf32>
    %58 = vector.shape_cast %57 : vector<8x8xf32> to vector<8x8x1xf32>
    %59 = tpu.reciprocal %58 {approx = true} : vector<8x8x1xf32> -> vector<8x8x1xf32>
    %60 = vector.broadcast %59 : vector<8x8x1xf32> to vector<8x8x8xf32>
    %61 = arith.mulf %56, %60 : vector<8x8x8xf32>
    %62 = vector.extract_strided_slice %61 {offsets = [0, 0, 0], sizes = [2, 8, 8], strides = [1, 1, 1]} : vector<8x8x8xf32> to vector<2x8x8xf32>
    %63 = vector.extract_strided_slice %37 {offsets = [0, 0, 0], sizes = [2, 8, 8], strides = [1, 1, 1]} : vector<2x8x32xf32> to vector<2x8x8xf32>
    "tpu.trace_start"() <{level = 10 : i32, message = "bqk,bkd->bqd"}> : () -> ()
    %cst_48 = arith.constant dense<0.000000e+00> : vector<2x8x8xf32>
    %64 = tpu.matmul %62, %63, %cst_48 {dimension_numbers = #tpu.dot_dimension_numbers<[2], [1], [1], [2], [0, 0, 0, 1, 1, 2], [0], [0]>} : vector<2x8x8xf32>, vector<2x8x8xf32>, vector<2x8x8xf32> -> vector<2x8x8xf32>
    "tpu.trace_stop"() : () -> ()
    %65 = vector.extract_strided_slice %61 {offsets = [2, 0, 0], sizes = [2, 8, 8], strides = [1, 1, 1]} : vector<8x8x8xf32> to vector<2x8x8xf32>
    %66 = vector.extract_strided_slice %37 {offsets = [0, 0, 8], sizes = [2, 8, 8], strides = [1, 1, 1]} : vector<2x8x32xf32> to vector<2x8x8xf32>
    "tpu.trace_start"() <{level = 10 : i32, message = "bqk,bkd->bqd"}> : () -> ()
    %cst_49 = arith.constant dense<0.000000e+00> : vector<2x8x8xf32>
    %67 = tpu.matmul %65, %66, %cst_49 {dimension_numbers = #tpu.dot_dimension_numbers<[2], [1], [1], [2], [0, 0, 0, 1, 1, 2], [0], [0]>} : vector<2x8x8xf32>, vector<2x8x8xf32>, vector<2x8x8xf32> -> vector<2x8x8xf32>
    "tpu.trace_stop"() : () -> ()
    %68 = vector.extract_strided_slice %61 {offsets = [4, 0, 0], sizes = [2, 8, 8], strides = [1, 1, 1]} : vector<8x8x8xf32> to vector<2x8x8xf32>
    %69 = vector.extract_strided_slice %37 {offsets = [0, 0, 16], sizes = [2, 8, 8], strides = [1, 1, 1]} : vector<2x8x32xf32> to vector<2x8x8xf32>
    "tpu.trace_start"() <{level = 10 : i32, message = "bqk,bkd->bqd"}> : () -> ()
    %cst_50 = arith.constant dense<0.000000e+00> : vector<2x8x8xf32>
    %70 = tpu.matmul %68, %69, %cst_50 {dimension_numbers = #tpu.dot_dimension_numbers<[2], [1], [1], [2], [0, 0, 0, 1, 1, 2], [0], [0]>} : vector<2x8x8xf32>, vector<2x8x8xf32>, vector<2x8x8xf32> -> vector<2x8x8xf32>
    "tpu.trace_stop"() : () -> ()
    %71 = vector.extract_strided_slice %61 {offsets = [6, 0, 0], sizes = [2, 8, 8], strides = [1, 1, 1]} : vector<8x8x8xf32> to vector<2x8x8xf32>
    %72 = vector.extract_strided_slice %37 {offsets = [0, 0, 24], sizes = [2, 8, 8], strides = [1, 1, 1]} : vector<2x8x32xf32> to vector<2x8x8xf32>
    "tpu.trace_start"() <{level = 10 : i32, message = "bqk,bkd->bqd"}> : () -> ()
    %cst_51 = arith.constant dense<0.000000e+00> : vector<2x8x8xf32>
    %73 = tpu.matmul %71, %72, %cst_51 {dimension_numbers = #tpu.dot_dimension_numbers<[2], [1], [1], [2], [0, 0, 0, 1, 1, 2], [0], [0]>} : vector<2x8x8xf32>, vector<2x8x8xf32>, vector<2x8x8xf32> -> vector<2x8x8xf32>
    "tpu.trace_stop"() : () -> ()
    %74 = tpu.concatenate %64, %67, %70, %73 in 2 : vector<2x8x8xf32>, vector<2x8x8xf32>, vector<2x8x8xf32>, vector<2x8x8xf32> -> vector<2x8x32xf32>
    %75 = vector.shape_cast %74 : vector<2x8x32xf32> to vector<16x32xf32>
    %cst_52 = arith.constant dense<0.000000e+00> : vector<16x32xf32>
    %76 = tpu.matmul %75, %8, %cst_52 {dimension_numbers = #tpu.dot_dimension_numbers<[1], [0], [0], [1], [0, 0, 1, 1], [], []>} : vector<16x32xf32>, vector<32x32xf32>, vector<16x32xf32> -> vector<16x32xf32>
    %77 = vector.broadcast %10 : vector<1x32xf32> to vector<16x32xf32>
    %78 = arith.addf %76, %77 : vector<16x32xf32>
    %79 = arith.addf %1, %78 : vector<16x32xf32>
    %cst_53 = arith.constant dense<0.000000e+00> : vector<16xf32>
    %80 = vector.multi_reduction <add>, %79, %cst_53 [1] : vector<16x32xf32> to vector<16xf32>
    %81 = vector.shape_cast %80 : vector<16xf32> to vector<16x1xf32>
    %cst_54 = arith.constant 3.200000e+01 : f32
    %82 = vector.broadcast %cst_54 : f32 to vector<16x1xf32>
    %83 = arith.divf %81, %82 : vector<16x1xf32>
    %84 = vector.broadcast %83 : vector<16x1xf32> to vector<16x32xf32>
    %85 = arith.subf %79, %84 : vector<16x32xf32>
    %86 = arith.mulf %85, %85 : vector<16x32xf32>
    %cst_55 = arith.constant dense<0.000000e+00> : vector<16xf32>
    %87 = vector.multi_reduction <add>, %86, %cst_55 [1] : vector<16x32xf32> to vector<16xf32>
    %88 = vector.shape_cast %87 : vector<16xf32> to vector<16x1xf32>
    %cst_56 = arith.constant 3.200000e+01 : f32
    %89 = vector.broadcast %cst_56 : f32 to vector<16x1xf32>
    %90 = arith.divf %88, %89 : vector<16x1xf32>
    %91 = vector.broadcast %83 : vector<16x1xf32> to vector<16x32xf32>
    %92 = arith.subf %79, %91 : vector<16x32xf32>
    %cst_57 = arith.constant 9.99999974E-6 : f32
    %93 = vector.broadcast %cst_57 : f32 to vector<16x1xf32>
    %94 = arith.addf %90, %93 : vector<16x1xf32>
    %95 = math.rsqrt %94 : vector<16x1xf32>
    %96 = vector.broadcast %95 : vector<16x1xf32> to vector<16x32xf32>
    %97 = arith.mulf %92, %96 : vector<16x32xf32>
    %98 = vector.broadcast %12 : vector<1x32xf32> to vector<16x32xf32>
    %99 = arith.mulf %97, %98 : vector<16x32xf32>
    %100 = vector.broadcast %14 : vector<1x32xf32> to vector<16x32xf32>
    %101 = arith.addf %99, %100 : vector<16x32xf32>
    %cst_58 = arith.constant dense<0.000000e+00> : vector<16x128xf32>
    %102 = tpu.matmul %101, %16, %cst_58 {dimension_numbers = #tpu.dot_dimension_numbers<[1], [0], [0], [1], [0, 0, 1, 1], [], []>} : vector<16x32xf32>, vector<32x128xf32>, vector<16x128xf32> -> vector<16x128xf32>
    %103 = vector.broadcast %18 : vector<1x128xf32> to vector<16x128xf32>
    %104 = arith.addf %102, %103 : vector<16x128xf32>
    %cst_59 = arith.constant 5.000000e-01 : f32
    %105 = vector.broadcast %cst_59 : f32 to vector<16x128xf32>
    %106 = arith.mulf %105, %104 : vector<16x128xf32>
    %cst_60 = arith.constant 0.707106769 : f32
    %107 = vector.broadcast %cst_60 : f32 to vector<16x128xf32>
    %108 = arith.mulf %104, %107 : vector<16x128xf32>
    %109 = math.erf %108 : vector<16x128xf32>
    %cst_61 = arith.constant 1.000000e+00 : f32
    %110 = vector.broadcast %cst_61 : f32 to vector<16x128xf32>
    %111 = arith.addf %110, %109 : vector<16x128xf32>
    %112 = arith.mulf %106, %111 : vector<16x128xf32>
    %cst_62 = arith.constant dense<0.000000e+00> : vector<16x32xf32>
    %113 = tpu.matmul %112, %20, %cst_62 {dimension_numbers = #tpu.dot_dimension_numbers<[1], [0], [0], [1], [0, 0, 1, 1], [], []>} : vector<16x128xf32>, vector<128x32xf32>, vector<16x32xf32> -> vector<16x32xf32>
    %114 = vector.broadcast %22 : vector<1x32xf32> to vector<16x32xf32>
    %115 = arith.addf %113, %114 : vector<16x32xf32>
    %116 = arith.addf %101, %115 : vector<16x32xf32>
    %cst_63 = arith.constant dense<0.000000e+00> : vector<16xf32>
    %117 = vector.multi_reduction <add>, %116, %cst_63 [1] : vector<16x32xf32> to vector<16xf32>
    %118 = vector.shape_cast %117 : vector<16xf32> to vector<16x1xf32>
    %cst_64 = arith.constant 3.200000e+01 : f32
    %119 = vector.broadcast %cst_64 : f32 to vector<16x1xf32>
    %120 = arith.divf %118, %119 : vector<16x1xf32>
    %121 = vector.broadcast %120 : vector<16x1xf32> to vector<16x32xf32>
    %122 = arith.subf %116, %121 : vector<16x32xf32>
    %123 = arith.mulf %122, %122 : vector<16x32xf32>
    %cst_65 = arith.constant dense<0.000000e+00> : vector<16xf32>
    %124 = vector.multi_reduction <add>, %123, %cst_65 [1] : vector<16x32xf32> to vector<16xf32>
    %125 = vector.shape_cast %124 : vector<16xf32> to vector<16x1xf32>
    %cst_66 = arith.constant 3.200000e+01 : f32
    %126 = vector.broadcast %cst_66 : f32 to vector<16x1xf32>
    %127 = arith.divf %125, %126 : vector<16x1xf32>
    %128 = vector.broadcast %120 : vector<16x1xf32> to vector<16x32xf32>
    %129 = arith.subf %116, %128 : vector<16x32xf32>
    %cst_67 = arith.constant 9.99999974E-6 : f32
    %130 = vector.broadcast %cst_67 : f32 to vector<16x1xf32>
    %131 = arith.addf %127, %130 : vector<16x1xf32>
    %132 = math.rsqrt %131 : vector<16x1xf32>
    %133 = vector.broadcast %132 : vector<16x1xf32> to vector<16x32xf32>
    %134 = arith.mulf %129, %133 : vector<16x32xf32>
    %135 = vector.broadcast %24 : vector<1x32xf32> to vector<16x32xf32>
    %136 = arith.mulf %134, %135 : vector<16x32xf32>
    %137 = vector.broadcast %26 : vector<1x32xf32> to vector<16x32xf32>
    %138 = arith.addf %136, %137 : vector<16x32xf32>
    %c1 = arith.constant 1 : index
    %c0_68 = arith.constant 0 : index
    %c0_69 = arith.constant 0 : index
    %139 = vector.load %arg2[%c1, %c0_68, %c0_69] : memref<2x32x96xf32, #tpu.memory_space<vmem>>, vector<1x32x96xf32>
    %140 = vector.shape_cast %139 : vector<1x32x96xf32> to vector<32x96xf32>
    %c1_70 = arith.constant 1 : index
    %c0_71 = arith.constant 0 : index
    %c0_72 = arith.constant 0 : index
    %141 = vector.load %arg3[%c1_70, %c0_71, %c0_72] : memref<2x1x96xf32, #tpu.memory_space<vmem>>, vector<1x1x96xf32>
    %142 = vector.shape_cast %141 : vector<1x1x96xf32> to vector<1x96xf32>
    %c1_73 = arith.constant 1 : index
    %c0_74 = arith.constant 0 : index
    %c0_75 = arith.constant 0 : index
    %143 = vector.load %arg4[%c1_73, %c0_74, %c0_75] : memref<2x32x32xf32, #tpu.memory_space<vmem>>, vector<1x32x32xf32>
    %144 = vector.shape_cast %143 : vector<1x32x32xf32> to vector<32x32xf32>
    %c1_76 = arith.constant 1 : index
    %c0_77 = arith.constant 0 : index
    %c0_78 = arith.constant 0 : index
    %145 = vector.load %arg5[%c1_76, %c0_77, %c0_78] : memref<2x1x32xf32, #tpu.memory_space<vmem>>, vector<1x1x32xf32>
    %146 = vector.shape_cast %145 : vector<1x1x32xf32> to vector<1x32xf32>
    %c1_79 = arith.constant 1 : index
    %c0_80 = arith.constant 0 : index
    %c0_81 = arith.constant 0 : index
    %147 = vector.load %arg6[%c1_79, %c0_80, %c0_81] : memref<2x1x32xf32, #tpu.memory_space<vmem>>, vector<1x1x32xf32>
    %148 = vector.shape_cast %147 : vector<1x1x32xf32> to vector<1x32xf32>
    %c1_82 = arith.constant 1 : index
    %c0_83 = arith.constant 0 : index
    %c0_84 = arith.constant 0 : index
    %149 = vector.load %arg7[%c1_82, %c0_83, %c0_84] : memref<2x1x32xf32, #tpu.memory_space<vmem>>, vector<1x1x32xf32>
    %150 = vector.shape_cast %149 : vector<1x1x32xf32> to vector<1x32xf32>
    %c1_85 = arith.constant 1 : index
    %c0_86 = arith.constant 0 : index
    %c0_87 = arith.constant 0 : index
    %151 = vector.load %arg8[%c1_85, %c0_86, %c0_87] : memref<2x32x128xf32, #tpu.memory_space<vmem>>, vector<1x32x128xf32>
    %152 = vector.shape_cast %151 : vector<1x32x128xf32> to vector<32x128xf32>
    %c1_88 = arith.constant 1 : index
    %c0_89 = arith.constant 0 : index
    %c0_90 = arith.constant 0 : index
    %153 = vector.load %arg9[%c1_88, %c0_89, %c0_90] : memref<2x1x128xf32, #tpu.memory_space<vmem>>, vector<1x1x128xf32>
    %154 = vector.shape_cast %153 : vector<1x1x128xf32> to vector<1x128xf32>
    %c1_91 = arith.constant 1 : index
    %c0_92 = arith.constant 0 : index
    %c0_93 = arith.constant 0 : index
    %155 = vector.load %arg10[%c1_91, %c0_92, %c0_93] : memref<2x128x32xf32, #tpu.memory_space<vmem>>, vector<1x128x32xf32>
    %156 = vector.shape_cast %155 : vector<1x128x32xf32> to vector<128x32xf32>
    %c1_94 = arith.constant 1 : index
    %c0_95 = arith.constant 0 : index
    %c0_96 = arith.constant 0 : index
    %157 = vector.load %arg11[%c1_94, %c0_95, %c0_96] : memref<2x1x32xf32, #tpu.memory_space<vmem>>, vector<1x1x32xf32>
    %158 = vector.shape_cast %157 : vector<1x1x32xf32> to vector<1x32xf32>
    %c1_97 = arith.constant 1 : index
    %c0_98 = arith.constant 0 : index
    %c0_99 = arith.constant 0 : index
    %159 = vector.load %arg12[%c1_97, %c0_98, %c0_99] : memref<2x1x32xf32, #tpu.memory_space<vmem>>, vector<1x1x32xf32>
    %160 = vector.shape_cast %159 : vector<1x1x32xf32> to vector<1x32xf32>
    %c1_100 = arith.constant 1 : index
    %c0_101 = arith.constant 0 : index
    %c0_102 = arith.constant 0 : index
    %161 = vector.load %arg13[%c1_100, %c0_101, %c0_102] : memref<2x1x32xf32, #tpu.memory_space<vmem>>, vector<1x1x32xf32>
    %162 = vector.shape_cast %161 : vector<1x1x32xf32> to vector<1x32xf32>
    %cst_103 = arith.constant dense<0.000000e+00> : vector<16x96xf32>
    %163 = tpu.matmul %138, %140, %cst_103 {dimension_numbers = #tpu.dot_dimension_numbers<[1], [0], [0], [1], [0, 0, 1, 1], [], []>} : vector<16x32xf32>, vector<32x96xf32>, vector<16x96xf32> -> vector<16x96xf32>
    %164 = vector.broadcast %142 : vector<1x96xf32> to vector<16x96xf32>
    %165 = arith.addf %163, %164 : vector<16x96xf32>
    %166 = vector.extract_strided_slice %165 {offsets = [0, 0], sizes = [16, 32], strides = [1, 1]} : vector<16x96xf32> to vector<16x32xf32>
    %cst_104 = arith.constant 0.353553385 : f32
    %167 = vector.broadcast %cst_104 : f32 to vector<16x32xf32>
    %168 = arith.mulf %166, %167 : vector<16x32xf32>
    %169 = vector.shape_cast %168 : vector<16x32xf32> to vector<2x8x32xf32>
    %170 = vector.extract_strided_slice %165 {offsets = [0, 32], sizes = [16, 32], strides = [1, 1]} : vector<16x96xf32> to vector<16x32xf32>
    %171 = vector.shape_cast %170 : vector<16x32xf32> to vector<2x8x32xf32>
    %172 = vector.extract_strided_slice %165 {offsets = [0, 64], sizes = [16, 32], strides = [1, 1]} : vector<16x96xf32> to vector<16x32xf32>
    %173 = vector.shape_cast %172 : vector<16x32xf32> to vector<2x8x32xf32>
    %174 = vector.extract_strided_slice %169 {offsets = [0, 0, 0], sizes = [2, 8, 8], strides = [1, 1, 1]} : vector<2x8x32xf32> to vector<2x8x8xf32>
    %175 = vector.extract_strided_slice %171 {offsets = [0, 0, 0], sizes = [2, 8, 8], strides = [1, 1, 1]} : vector<2x8x32xf32> to vector<2x8x8xf32>
    "tpu.trace_start"() <{level = 10 : i32, message = "bqd,bkd->bqk"}> : () -> ()
    %cst_105 = arith.constant dense<0.000000e+00> : vector<2x8x8xf32>
    %176 = tpu.matmul %174, %175, %cst_105 {dimension_numbers = #tpu.dot_dimension_numbers<[2], [2], [1], [1], [0, 0, 0, 1, 1, 1], [0], [0]>} : vector<2x8x8xf32>, vector<2x8x8xf32>, vector<2x8x8xf32> -> vector<2x8x8xf32>
    "tpu.trace_stop"() : () -> ()
    %177 = vector.extract_strided_slice %169 {offsets = [0, 0, 8], sizes = [2, 8, 8], strides = [1, 1, 1]} : vector<2x8x32xf32> to vector<2x8x8xf32>
    %178 = vector.extract_strided_slice %171 {offsets = [0, 0, 8], sizes = [2, 8, 8], strides = [1, 1, 1]} : vector<2x8x32xf32> to vector<2x8x8xf32>
    "tpu.trace_start"() <{level = 10 : i32, message = "bqd,bkd->bqk"}> : () -> ()
    %cst_106 = arith.constant dense<0.000000e+00> : vector<2x8x8xf32>
    %179 = tpu.matmul %177, %178, %cst_106 {dimension_numbers = #tpu.dot_dimension_numbers<[2], [2], [1], [1], [0, 0, 0, 1, 1, 1], [0], [0]>} : vector<2x8x8xf32>, vector<2x8x8xf32>, vector<2x8x8xf32> -> vector<2x8x8xf32>
    "tpu.trace_stop"() : () -> ()
    %180 = vector.extract_strided_slice %169 {offsets = [0, 0, 16], sizes = [2, 8, 8], strides = [1, 1, 1]} : vector<2x8x32xf32> to vector<2x8x8xf32>
    %181 = vector.extract_strided_slice %171 {offsets = [0, 0, 16], sizes = [2, 8, 8], strides = [1, 1, 1]} : vector<2x8x32xf32> to vector<2x8x8xf32>
    "tpu.trace_start"() <{level = 10 : i32, message = "bqd,bkd->bqk"}> : () -> ()
    %cst_107 = arith.constant dense<0.000000e+00> : vector<2x8x8xf32>
    %182 = tpu.matmul %180, %181, %cst_107 {dimension_numbers = #tpu.dot_dimension_numbers<[2], [2], [1], [1], [0, 0, 0, 1, 1, 1], [0], [0]>} : vector<2x8x8xf32>, vector<2x8x8xf32>, vector<2x8x8xf32> -> vector<2x8x8xf32>
    "tpu.trace_stop"() : () -> ()
    %183 = vector.extract_strided_slice %169 {offsets = [0, 0, 24], sizes = [2, 8, 8], strides = [1, 1, 1]} : vector<2x8x32xf32> to vector<2x8x8xf32>
    %184 = vector.extract_strided_slice %171 {offsets = [0, 0, 24], sizes = [2, 8, 8], strides = [1, 1, 1]} : vector<2x8x32xf32> to vector<2x8x8xf32>
    "tpu.trace_start"() <{level = 10 : i32, message = "bqd,bkd->bqk"}> : () -> ()
    %cst_108 = arith.constant dense<0.000000e+00> : vector<2x8x8xf32>
    %185 = tpu.matmul %183, %184, %cst_108 {dimension_numbers = #tpu.dot_dimension_numbers<[2], [2], [1], [1], [0, 0, 0, 1, 1, 1], [0], [0]>} : vector<2x8x8xf32>, vector<2x8x8xf32>, vector<2x8x8xf32> -> vector<2x8x8xf32>
    "tpu.trace_stop"() : () -> ()
    %186 = tpu.concatenate %176, %179, %182, %185 in 0 : vector<2x8x8xf32>, vector<2x8x8xf32>, vector<2x8x8xf32>, vector<2x8x8xf32> -> vector<8x8x8xf32>
    %187 = arith.addf %186, %2 : vector<8x8x8xf32>
    %cst_109 = arith.constant dense<0xFF800000> : vector<8x8xf32>
    %188 = vector.multi_reduction <maximumf>, %187, %cst_109 [2] : vector<8x8x8xf32> to vector<8x8xf32>
    %189 = vector.shape_cast %188 : vector<8x8xf32> to vector<8x8x1xf32>
    %190 = vector.broadcast %189 : vector<8x8x1xf32> to vector<8x8x8xf32>
    %191 = arith.subf %187, %190 : vector<8x8x8xf32>
    %192 = math.exp %191 : vector<8x8x8xf32>
    %cst_110 = arith.constant dense<0.000000e+00> : vector<8x8xf32>
    %193 = vector.multi_reduction <add>, %192, %cst_110 [2] : vector<8x8x8xf32> to vector<8x8xf32>
    %194 = vector.shape_cast %193 : vector<8x8xf32> to vector<8x8x1xf32>
    %195 = tpu.reciprocal %194 {approx = true} : vector<8x8x1xf32> -> vector<8x8x1xf32>
    %196 = vector.broadcast %195 : vector<8x8x1xf32> to vector<8x8x8xf32>
    %197 = arith.mulf %192, %196 : vector<8x8x8xf32>
    %198 = vector.extract_strided_slice %197 {offsets = [0, 0, 0], sizes = [2, 8, 8], strides = [1, 1, 1]} : vector<8x8x8xf32> to vector<2x8x8xf32>
    %199 = vector.extract_strided_slice %173 {offsets = [0, 0, 0], sizes = [2, 8, 8], strides = [1, 1, 1]} : vector<2x8x32xf32> to vector<2x8x8xf32>
    "tpu.trace_start"() <{level = 10 : i32, message = "bqk,bkd->bqd"}> : () -> ()
    %cst_111 = arith.constant dense<0.000000e+00> : vector<2x8x8xf32>
    %200 = tpu.matmul %198, %199, %cst_111 {dimension_numbers = #tpu.dot_dimension_numbers<[2], [1], [1], [2], [0, 0, 0, 1, 1, 2], [0], [0]>} : vector<2x8x8xf32>, vector<2x8x8xf32>, vector<2x8x8xf32> -> vector<2x8x8xf32>
    "tpu.trace_stop"() : () -> ()
    %201 = vector.extract_strided_slice %197 {offsets = [2, 0, 0], sizes = [2, 8, 8], strides = [1, 1, 1]} : vector<8x8x8xf32> to vector<2x8x8xf32>
    %202 = vector.extract_strided_slice %173 {offsets = [0, 0, 8], sizes = [2, 8, 8], strides = [1, 1, 1]} : vector<2x8x32xf32> to vector<2x8x8xf32>
    "tpu.trace_start"() <{level = 10 : i32, message = "bqk,bkd->bqd"}> : () -> ()
    %cst_112 = arith.constant dense<0.000000e+00> : vector<2x8x8xf32>
    %203 = tpu.matmul %201, %202, %cst_112 {dimension_numbers = #tpu.dot_dimension_numbers<[2], [1], [1], [2], [0, 0, 0, 1, 1, 2], [0], [0]>} : vector<2x8x8xf32>, vector<2x8x8xf32>, vector<2x8x8xf32> -> vector<2x8x8xf32>
    "tpu.trace_stop"() : () -> ()
    %204 = vector.extract_strided_slice %197 {offsets = [4, 0, 0], sizes = [2, 8, 8], strides = [1, 1, 1]} : vector<8x8x8xf32> to vector<2x8x8xf32>
    %205 = vector.extract_strided_slice %173 {offsets = [0, 0, 16], sizes = [2, 8, 8], strides = [1, 1, 1]} : vector<2x8x32xf32> to vector<2x8x8xf32>
    "tpu.trace_start"() <{level = 10 : i32, message = "bqk,bkd->bqd"}> : () -> ()
    %cst_113 = arith.constant dense<0.000000e+00> : vector<2x8x8xf32>
    %206 = tpu.matmul %204, %205, %cst_113 {dimension_numbers = #tpu.dot_dimension_numbers<[2], [1], [1], [2], [0, 0, 0, 1, 1, 2], [0], [0]>} : vector<2x8x8xf32>, vector<2x8x8xf32>, vector<2x8x8xf32> -> vector<2x8x8xf32>
    "tpu.trace_stop"() : () -> ()
    %207 = vector.extract_strided_slice %197 {offsets = [6, 0, 0], sizes = [2, 8, 8], strides = [1, 1, 1]} : vector<8x8x8xf32> to vector<2x8x8xf32>
    %208 = vector.extract_strided_slice %173 {offsets = [0, 0, 24], sizes = [2, 8, 8], strides = [1, 1, 1]} : vector<2x8x32xf32> to vector<2x8x8xf32>
    "tpu.trace_start"() <{level = 10 : i32, message = "bqk,bkd->bqd"}> : () -> ()
    %cst_114 = arith.constant dense<0.000000e+00> : vector<2x8x8xf32>
    %209 = tpu.matmul %207, %208, %cst_114 {dimension_numbers = #tpu.dot_dimension_numbers<[2], [1], [1], [2], [0, 0, 0, 1, 1, 2], [0], [0]>} : vector<2x8x8xf32>, vector<2x8x8xf32>, vector<2x8x8xf32> -> vector<2x8x8xf32>
    "tpu.trace_stop"() : () -> ()
    %210 = tpu.concatenate %200, %203, %206, %209 in 2 : vector<2x8x8xf32>, vector<2x8x8xf32>, vector<2x8x8xf32>, vector<2x8x8xf32> -> vector<2x8x32xf32>
    %211 = vector.shape_cast %210 : vector<2x8x32xf32> to vector<16x32xf32>
    %cst_115 = arith.constant dense<0.000000e+00> : vector<16x32xf32>
    %212 = tpu.matmul %211, %144, %cst_115 {dimension_numbers = #tpu.dot_dimension_numbers<[1], [0], [0], [1], [0, 0, 1, 1], [], []>} : vector<16x32xf32>, vector<32x32xf32>, vector<16x32xf32> -> vector<16x32xf32>
    %213 = vector.broadcast %146 : vector<1x32xf32> to vector<16x32xf32>
    %214 = arith.addf %212, %213 : vector<16x32xf32>
    %215 = arith.addf %138, %214 : vector<16x32xf32>
    %cst_116 = arith.constant dense<0.000000e+00> : vector<16xf32>
    %216 = vector.multi_reduction <add>, %215, %cst_116 [1] : vector<16x32xf32> to vector<16xf32>
    %217 = vector.shape_cast %216 : vector<16xf32> to vector<16x1xf32>
    %cst_117 = arith.constant 3.200000e+01 : f32
    %218 = vector.broadcast %cst_117 : f32 to vector<16x1xf32>
    %219 = arith.divf %217, %218 : vector<16x1xf32>
    %220 = vector.broadcast %219 : vector<16x1xf32> to vector<16x32xf32>
    %221 = arith.subf %215, %220 : vector<16x32xf32>
    %222 = arith.mulf %221, %221 : vector<16x32xf32>
    %cst_118 = arith.constant dense<0.000000e+00> : vector<16xf32>
    %223 = vector.multi_reduction <add>, %222, %cst_118 [1] : vector<16x32xf32> to vector<16xf32>
    %224 = vector.shape_cast %223 : vector<16xf32> to vector<16x1xf32>
    %cst_119 = arith.constant 3.200000e+01 : f32
    %225 = vector.broadcast %cst_119 : f32 to vector<16x1xf32>
    %226 = arith.divf %224, %225 : vector<16x1xf32>
    %227 = vector.broadcast %219 : vector<16x1xf32> to vector<16x32xf32>
    %228 = arith.subf %215, %227 : vector<16x32xf32>
    %cst_120 = arith.constant 9.99999974E-6 : f32
    %229 = vector.broadcast %cst_120 : f32 to vector<16x1xf32>
    %230 = arith.addf %226, %229 : vector<16x1xf32>
    %231 = math.rsqrt %230 : vector<16x1xf32>
    %232 = vector.broadcast %231 : vector<16x1xf32> to vector<16x32xf32>
    %233 = arith.mulf %228, %232 : vector<16x32xf32>
    %234 = vector.broadcast %148 : vector<1x32xf32> to vector<16x32xf32>
    %235 = arith.mulf %233, %234 : vector<16x32xf32>
    %236 = vector.broadcast %150 : vector<1x32xf32> to vector<16x32xf32>
    %237 = arith.addf %235, %236 : vector<16x32xf32>
    %cst_121 = arith.constant dense<0.000000e+00> : vector<16x128xf32>
    %238 = tpu.matmul %237, %152, %cst_121 {dimension_numbers = #tpu.dot_dimension_numbers<[1], [0], [0], [1], [0, 0, 1, 1], [], []>} : vector<16x32xf32>, vector<32x128xf32>, vector<16x128xf32> -> vector<16x128xf32>
    %239 = vector.broadcast %154 : vector<1x128xf32> to vector<16x128xf32>
    %240 = arith.addf %238, %239 : vector<16x128xf32>
    %cst_122 = arith.constant 5.000000e-01 : f32
    %241 = vector.broadcast %cst_122 : f32 to vector<16x128xf32>
    %242 = arith.mulf %241, %240 : vector<16x128xf32>
    %cst_123 = arith.constant 0.707106769 : f32
    %243 = vector.broadcast %cst_123 : f32 to vector<16x128xf32>
    %244 = arith.mulf %240, %243 : vector<16x128xf32>
    %245 = math.erf %244 : vector<16x128xf32>
    %cst_124 = arith.constant 1.000000e+00 : f32
    %246 = vector.broadcast %cst_124 : f32 to vector<16x128xf32>
    %247 = arith.addf %246, %245 : vector<16x128xf32>
    %248 = arith.mulf %242, %247 : vector<16x128xf32>
    %cst_125 = arith.constant dense<0.000000e+00> : vector<16x32xf32>
    %249 = tpu.matmul %248, %156, %cst_125 {dimension_numbers = #tpu.dot_dimension_numbers<[1], [0], [0], [1], [0, 0, 1, 1], [], []>} : vector<16x128xf32>, vector<128x32xf32>, vector<16x32xf32> -> vector<16x32xf32>
    %250 = vector.broadcast %158 : vector<1x32xf32> to vector<16x32xf32>
    %251 = arith.addf %249, %250 : vector<16x32xf32>
    %252 = arith.addf %237, %251 : vector<16x32xf32>
    %cst_126 = arith.constant dense<0.000000e+00> : vector<16xf32>
    %253 = vector.multi_reduction <add>, %252, %cst_126 [1] : vector<16x32xf32> to vector<16xf32>
    %254 = vector.shape_cast %253 : vector<16xf32> to vector<16x1xf32>
    %cst_127 = arith.constant 3.200000e+01 : f32
    %255 = vector.broadcast %cst_127 : f32 to vector<16x1xf32>
    %256 = arith.divf %254, %255 : vector<16x1xf32>
    %257 = vector.broadcast %256 : vector<16x1xf32> to vector<16x32xf32>
    %258 = arith.subf %252, %257 : vector<16x32xf32>
    %259 = arith.mulf %258, %258 : vector<16x32xf32>
    %cst_128 = arith.constant dense<0.000000e+00> : vector<16xf32>
    %260 = vector.multi_reduction <add>, %259, %cst_128 [1] : vector<16x32xf32> to vector<16xf32>
    %261 = vector.shape_cast %260 : vector<16xf32> to vector<16x1xf32>
    %cst_129 = arith.constant 3.200000e+01 : f32
    %262 = vector.broadcast %cst_129 : f32 to vector<16x1xf32>
    %263 = arith.divf %261, %262 : vector<16x1xf32>
    %264 = vector.broadcast %256 : vector<16x1xf32> to vector<16x32xf32>
    %265 = arith.subf %252, %264 : vector<16x32xf32>
    %cst_130 = arith.constant 9.99999974E-6 : f32
    %266 = vector.broadcast %cst_130 : f32 to vector<16x1xf32>
    %267 = arith.addf %263, %266 : vector<16x1xf32>
    %268 = math.rsqrt %267 : vector<16x1xf32>
    %269 = vector.broadcast %268 : vector<16x1xf32> to vector<16x32xf32>
    %270 = arith.mulf %265, %269 : vector<16x32xf32>
    %271 = vector.broadcast %160 : vector<1x32xf32> to vector<16x32xf32>
    %272 = arith.mulf %270, %271 : vector<16x32xf32>
    %273 = vector.broadcast %162 : vector<1x32xf32> to vector<16x32xf32>
    %274 = arith.addf %272, %273 : vector<16x32xf32>
    %275 = vector.shape_cast %274 : vector<16x32xf32> to vector<2x8x32xf32>
    %c0_131 = arith.constant 0 : index
    %c0_132 = arith.constant 0 : index
    %c0_133 = arith.constant 0 : index
    %276 = vector.load %arg14[%c0_131, %c0_132, %c0_133] : memref<2x8x32xf32, #tpu.memory_space<vmem>>, vector<2x8x32xf32>
    tpu.vector_store %arg14[%c0_131, %c0_132, %c0_133], %275 {strides = array<i32>} : memref<2x8x32xf32, #tpu.memory_space<vmem>>, vector<2x8x32xf32>,
    return
  }
}

</mosaic_0001>

<bundles_post_ra>
// kernel: tpu_custom_call.1
= control target key start
LH: loop header
LB: loop body
LE: loop exit
PB: predicated region body
PF: predicated region fallthrough
CT: control target
= control target key end

     0   :  { %vm100_vm0 = vcmask 261120   ;;  %s5281_s0 = inlined_call_operand.vmem [shape: f32[2,8,32], index: 0, kind: input, shape index: {}]   ;;  %s5282_s1 = inlined_call_operand.vmem [shape: f32[8,8,8], index: 1, kind: input, shape index: {}]   ;;  %s5283_s2 = inlined_call_operand.vmem [shape: f32[2,32,96], index: 2, kind: input, shape index: {}]   ;;  %s5284_s3 = inlined_call_operand.vmem [shape: f32[2,1,96], index: 3, kind: input, shape index: {}]   ;;  %s5285_s4 = inlined_call_operand.vmem [shape: f32[2,32,32], index: 4, kind: input, shape index: {}]   ;;  %s5286_s5 = inlined_call_operand.vmem [shape: f32[2,1,32], index: 5, kind: input, shape index: {}]   ;;  %s5287_s6 = inlined_call_operand.vmem [shape: f32[2,1,32], index: 6, kind: input, shape index: {}]   ;;  %s5288_s7 = inlined_call_operand.vmem [shape: f32[2,1,32], index: 7, kind: input, shape index: {}]   ;;  %s5289_s8 = inlined_call_operand.vmem [shape: f32[2,32,128], index: 8, kind: input, shape index: {}]   ;;  %s5290_s9 = inlined_call_operand.vmem [shape: f32[2,1,128], index: 9, kind: input, shape index: {}]   ;;  %s5291_s10 = inlined_call_operand.vmem [shape: f32[2,128,32], index: 10, kind: input, shape index: {}]   ;;  %s5292_s11 = inlined_call_operand.vmem [shape: f32[2,1,32], index: 11, kind: input, shape index: {}]   ;;  %s5293_s12 = inlined_call_operand.vmem [shape: f32[2,1,32], index: 12, kind: input, shape index: {}]   ;;  %s5294_s13 = inlined_call_operand.vmem [shape: f32[2,1,32], index: 13, kind: input, shape index: {}]   ;;  %s5295_s14 = inlined_call_operand.hbm [shape: f32[2,8,32], index: 14, kind: output, shape index: {}]  }
   0x1   :  { %v58_v0 = vld [vmem:[%s5283_s2] sm:$0xff]  ;;  %v59_v1 = vld [vmem:[%s5283_s2 + $0x8] sm:$0xff]  ;;  %v60_v2 = vld [vmem:[%s5283_s2 + $0x10] sm:$0xff] }
   0x2   :  { %v4309_v3 = vpack.c.bf16 %v59_v1, %v58_v0  ;;  %v61_v4 = vld [vmem:[%s5283_s2 + $0x18] sm:$0xff]  ;;  %v4659_v5 = vld [vmem:[%s5281_s0] sm:$0xff] }
   0x3   :  { %v4313_v6 = vpack.c.bf16 %v61_v4, %v60_v2  ;;  %4021 = vmatprep.mubr.msk.f32.mxu1 %vm100_vm0, %v4659_v5 }
   0x4   :  { %19 = vsyncpa [#allocation3], 0  ;;  %4310 = vmatprep.subr.bf16.mxu1 %v4309_v3  ;;  %v4666_v7 = vld [vmem:[%s5281_s0 + $0x8] sm:$0xff]  ;;  %v4551_v8 = vmov 0.0   ;;  %vm4552_vm1 = vmmov 0   ;;  %s4553_s0 = smov 88  }
   0x5   :  { %4312 = vmatpush3.bf16.msra.mxu1 %v4309_v3  ;;  %4034 = vmatprep.subr.mxu0 %v4551_v8  ;;  %v3765_v9 = vld [vmem:[%s5284_s3] ss:$0 sm:$0xff]  ;;  %s4554_s27 = smov 96   ;;  %s4555_s28 = smov 80   ;;  %vm187_vm2 = vcmask 64512   ;;  %v4756_v34 = vld [vmem:[%s5282_s1 + $0x8] sm:$0xff] }
   0x6   :  { %4314 = vmatprep.subr.bf16.mxu1 %v4313_v6  ;;  %4036 = vmatprep.mubr.msk.f32.mxu0 %vm4552_vm1, %v4551_v8  ;;  %s4556_s29 = smov 72   ;;  %s4557_s30 = smov 120   ;;  %v4750_v30 = vld [vmem:[%s5282_s1] sm:$0xff]  ;;  %v4764_v40 = vld [vmem:[%s5282_s1 + $0x10] sm:$0xff]  ;;  %v4769_v42 = vld [vmem:[%s5282_s1 + $0x18] sm:$0xff]  ;;  %vm1539_vm3 = vcmask 130048  }
   0x7   :  { %s4558_s15 = smov 112   ;;  %s4559_s16 = smov 104   ;;  %v4775_v47 = vld [vmem:[%s5282_s1 + $0x20] sm:$0xff]  ;;  %v4782_v51 = vld [vmem:[%s5282_s1 + $0x28] sm:$0xff]  ;;  %v4788_v56 = vld [vmem:[%s5282_s1 + $0x30] sm:$0xff]  ;;  %vm1542_vm4 = vcmask 195584  }
   0x8   :  { %v4796_v61 = vld [vmem:[%s5282_s1 + $0x38] sm:$0xff]  ;;  %s4560_s23 = smov 64   ;;  %s5306_s1 = smov 56  }
   0x9   :  { %4316 = vmatpush3.bf16.msra.mxu1 %v4313_v6  ;;  %s5304_s24 = smov 48   ;;  %s5296_s25 = smov 40  }
   0xa   :  { %4024 = vmatprep.subr.mxu1 %v4551_v8  ;;  %s5302_s26 = smov 8   ;;  %s5300_s17 = smov 16  }
   0xb   :  { %s5313_s19 = smov 24   ;;  %s4567_s20 = smov [#allocation2]  }
   0xc   :  { %4022 = vmatmul.mubr.msk.f32.vlgmr.msra.gmra.mrb[0].mxu1 %vm100_vm0, %v4666_v7 }
   0xd   :  { %4026 = vmatprep.mubr.msk.f32.mxu1 %vm4552_vm1, %v4551_v8 }
  0xdf   :  { %v4023_v10 = vpop.f32.mrb[0].mxu1 }
  0xe0   :  { %v4679_v11 = vadd.f32 %v4023_v10, %v3765_v9  ;;  %v173_v12 = vpop.f32.mrb[1].mxu1 }
  0xe1   :  { %v4685_v13 = vadd.f32 %v3765_v9, %v173_v12 }
  0xe2   :  { %421 = vrot.lane.b32.xlu1 %v4679_v11, %s4553_s0  ;;  %264 = vrot.lane.b32.xlu0 %v4679_v11, %s4554_s27  ;;  %v183_v14 = vmul.f32 0.35355338, %v4679_v11 }
  0xe3   :  { %v182_v15 = vmul.f32 0.35355338, %v4685_v13 }
  0xe6   :  { %577 = vrot.lane.b32.xlu1 %v4679_v11, %s4555_s28  ;;  %185 = vrot.lane.b32.xlu0 %v4685_v13, %s4554_s27 }
  0xea   :  { %733 = vrot.lane.b32.xlu1 %v4679_v11, %s4556_s29  ;;  %499 = vrot.lane.b32.xlu0 %v4685_v13, %s4555_s28 }
  0xee   :  { %343 = vrot.lane.b32.xlu1 %v4685_v13, %s4553_s0  ;;  %655 = vrot.lane.b32.xlu0 %v4685_v13, %s4556_s29 }
  0xf2   :  { %419 = vrot.lane.b32.xlu1 %v183_v14, %s4557_s30  ;;  %341 = vrot.lane.b32.xlu0 %v182_v15, %s4557_s30 }
  0xf6   :  { %575 = vrot.lane.b32.xlu1 %v183_v14, %s4558_s15  ;;  %497 = vrot.lane.b32.xlu0 %v182_v15, %s4558_s15 }
  0xfa   :  { %731 = vrot.lane.b32.xlu1 %v183_v14, %s4559_s16  ;;  %653 = vrot.lane.b32.xlu0 %v182_v15, %s4559_s16 }
 0x154   :  { %v422_v16 = vpop.permute.xlu1 %421  ;;  %v265_v17 = vpop.permute.xlu0 %264 }
 0x158   :  { %v578_v18 = vpop.permute.xlu1 %577  ;;  %v186_v19 = vpop.permute.xlu0 %185 }
 0x159   :  { %4025 = vmatpush3.xpose.msk.msra.mxu1 %vm187_vm2, %v186_v19 }
 0x15a   :  { %4029 = vmatprep.subr.mxu1 %v4551_v8 }
 0x15c   :  { %v734_v20 = vpop.permute.xlu1 %733  ;;  %v500_v21 = vpop.permute.xlu0 %499  ;;  %4027 = vmatmul.mubr.msk.f32.vlgmr.msra.gmra.mrb[2].mxu1 %vm187_vm2, %v182_v15 }
 0x15d   :  { %4030 = vmatpush3.xpose.msk.msra.mxu1 %vm187_vm2, %v265_v17  ;;  %4031 = vmatprep.mubr.msk.f32.mxu1 %vm4552_vm1, %v4551_v8 }
 0x15e   :  { %4039 = vmatprep.subr.mxu1 %v4551_v8 }
 0x160   :  { %v344_v22 = vpop.permute.xlu1 %343  ;;  %v656_v23 = vpop.permute.xlu0 %655  ;;  %4032 = vmatmul.mubr.msk.f32.vlgmr.msra.gmra.mrb[4].mxu1 %vm187_vm2, %v183_v14 }
 0x161   :  { %4035 = vmatpush3.xpose.msk.msra.mxu0 %vm187_vm2, %v344_v22  ;;  %4040 = vmatpush3.xpose.msk.msra.mxu1 %vm187_vm2, %v422_v16 }
 0x162   :  { %4044 = vmatprep.subr.mxu0 %v4551_v8  ;;  %4041 = vmatprep.mubr.msk.f32.mxu1 %vm4552_vm1, %v4551_v8 }
 0x163   :  { %4049 = vmatprep.subr.mxu1 %v4551_v8 }
 0x164   :  { %v420_v24 = vpop.permute.xlu1 %419  ;;  %v342_v25 = vpop.permute.xlu0 %341 }
 0x165   :  { %4037 = vmatmul.mubr.msk.f32.vlgmr.msra.gmra.mrb[0].mxu0 %vm187_vm2, %v342_v25  ;;  %4042 = vmatmul.mubr.msk.f32.vlgmr.msra.gmra.mrb[6].mxu1 %vm187_vm2, %v420_v24 }
 0x166   :  { %4045 = vmatpush3.xpose.msk.msra.mxu0 %vm187_vm2, %v500_v21  ;;  %4050 = vmatpush3.xpose.msk.msra.mxu1 %vm187_vm2, %v578_v18 }
 0x167   :  { %4046 = vmatprep.mubr.msk.f32.mxu0 %vm4552_vm1, %v4551_v8  ;;  %4054 = vmatprep.subr.mxu0 %v4551_v8 }
 0x168   :  { %v576_v26 = vpop.permute.xlu1 %575  ;;  %v498_v27 = vpop.permute.xlu0 %497  ;;  %4051 = vmatprep.mubr.msk.f32.mxu1 %vm4552_vm1, %v4551_v8  ;;  %4059 = vmatprep.subr.mxu1 %v4551_v8 }
 0x169   :  { %4047 = vmatmul.mubr.msk.f32.vlgmr.msra.gmra.mrb[2].mxu0 %vm187_vm2, %v498_v27  ;;  %4052 = vmatmul.mubr.msk.f32.vlgmr.msra.gmra.mrb[8].mxu1 %vm187_vm2, %v576_v26 }
 0x16a   :  { %4055 = vmatpush3.xpose.msk.msra.mxu0 %vm187_vm2, %v656_v23  ;;  %4060 = vmatpush3.xpose.msk.msra.mxu1 %vm187_vm2, %v734_v20 }
 0x16b   :  { %4056 = vmatprep.mubr.msk.f32.mxu0 %vm4552_vm1, %v4551_v8  ;;  %4061 = vmatprep.mubr.msk.f32.mxu1 %vm4552_vm1, %v4551_v8 }
 0x16c   :  { %v732_v28 = vpop.permute.xlu1 %731  ;;  %v654_v29 = vpop.permute.xlu0 %653  ;;  %4064 = vmatprep.subr.mxu0 %v4551_v8  ;;  %4069 = vmatprep.subr.mxu1 %v4551_v8 }
 0x16d   :  { %4057 = vmatmul.mubr.msk.f32.vlgmr.msra.gmra.mrb[4].mxu0 %vm187_vm2, %v654_v29  ;;  %4062 = vmatmul.mubr.msk.f32.vlgmr.msra.gmra.mrb[10].mxu1 %vm187_vm2, %v732_v28 }
 0x16e   :  { %4066 = vmatprep.mubr.msk.f32.mxu0 %vm4552_vm1, %v4551_v8  ;;  %4071 = vmatprep.mubr.msk.f32.mxu1 %vm4552_vm1, %v4551_v8 }
 0x22f   :  { %v259_v31 = vpop.f32.mrb[2].mxu1 }
 0x230   :  { %v809_v32 = vadd.f32 %v259_v31, %v4750_v30  ;;  %v4028_v33 = vpop.f32.mrb[3].mxu1 }
 0x232   :  { %v817_v35 = vsel %vm187_vm2, %v809_v32, -inf }
 0x233   :  { %818 = vmax.xlane.f32.xlu0 %v817_v35  ;;  %v337_v36 = vpop.f32.mrb[4].mxu1 }
 0x234   :  { %v810_v37 = vadd.f32 %v337_v36, %v4756_v34  ;;  %v4033_v38 = vpop.f32.mrb[5].mxu1 }
 0x236   :  { %v820_v39 = vsel %vm187_vm2, %v810_v37, -inf }
 0x237   :  { %821 = vmax.xlane.f32.xlu1 %v820_v39 }
 0x238   :  { %v415_v41 = vpop.f32.mrb[0].mxu0  ;;  %v493_v43 = vpop.f32.mrb[6].mxu1 }
 0x239   :  { %v811_v44 = vadd.f32 %v415_v41, %v4764_v40  ;;  %v4038_v45 = vpop.f32.mrb[1].mxu0  ;;  %v4043_v46 = vpop.f32.mrb[7].mxu1  ;;  %v812_v48 = vadd.f32 %v493_v43, %v4769_v42 }
 0x23b   :  { %v823_v49 = vsel %vm187_vm2, %v811_v44, -inf  ;;  %v826_v59 = vsel %vm187_vm2, %v812_v48, -inf }
 0x23c   :  { %v571_v50 = vpop.f32.mrb[2].mxu0  ;;  %824 = vmax.xlane.f32.xlu0 %v823_v49  ;;  %v649_v52 = vpop.f32.mrb[8].mxu1 }
 0x23d   :  { %v813_v53 = vadd.f32 %v571_v50, %v4775_v47  ;;  %v4048_v54 = vpop.f32.mrb[3].mxu0  ;;  %v4053_v55 = vpop.f32.mrb[9].mxu1  ;;  %v814_v57 = vadd.f32 %v649_v52, %v4782_v51 }
 0x23f   :  { %v829_v58 = vsel %vm187_vm2, %v813_v53, -inf  ;;  %v832_v4 = vsel %vm187_vm2, %v814_v57, -inf }
 0x240   :  { %v727_v60 = vpop.f32.mrb[4].mxu0  ;;  %830 = vmax.xlane.f32.xlu1 %v829_v58  ;;  %827 = vmax.xlane.f32.xlu0 %v826_v59  ;;  %v805_v62 = vpop.f32.mrb[10].mxu1 }
 0x241   :  { %v815_v63 = vadd.f32 %v727_v60, %v4788_v56  ;;  %v4058_v0 = vpop.f32.mrb[5].mxu0  ;;  %v4063_v1 = vpop.f32.mrb[11].mxu1  ;;  %v816_v2 = vadd.f32 %v805_v62, %v4796_v61 }
 0x243   :  { %v835_v3 = vsel %vm187_vm2, %v815_v63, -inf  ;;  %v838_v6 = vsel %vm187_vm2, %v816_v2, -inf }
 0x244   :  { %836 = vmax.xlane.f32.xlu1 %v835_v3  ;;  %833 = vmax.xlane.f32.xlu0 %v832_v4 }
 0x248   :  { %839 = vmax.xlane.f32.xlu0 %v838_v6 }
 0x255   :  { %905 = vrot.lane.b32.xlu1 %v4685_v13, %s4560_s23 }
 0x259   :  { %1057 = vrot.lane.b32.xlu1 %v4685_v13, %s5306_s1 }
 0x25d   :  { %1133 = vrot.lane.b32.xlu1 %v4679_v11, %s5306_s1 }
 0x25e   :  { %981 = vrot.lane.b32.xlu0 %v4679_v11, %s4560_s23 }
 0x261   :  { %1285 = vrot.lane.b32.xlu1 %v4679_v11, %s5304_s24 }
 0x262   :  { %1209 = vrot.lane.b32.xlu0 %v4685_v13, %s5304_s24 }
 0x2c0   :  { %v819_v9 = vpop.xlane.xlu0 %818 }
 0x2c1   :  { %v841_v10 = vsub.f32 %v809_v32, %v819_v9 }
 0x2c3   :  { %v849_v12 = vmul.f32 1.442695, %v841_v10 }
 0x2c4   :  { %v822_v14 = vpop.xlane.xlu1 %821 }
 0x2c5   :  { %4439 = vpow2.f32 %v849_v12  ;;  %v842_v15 = vsub.f32 %v810_v37, %v822_v14 }
 0x2c7   :  { %v851_v16 = vmul.f32 1.442695, %v842_v15 }
 0x2c9   :  { %4441 = vpow2.f32 %v851_v16  ;;  %v825_v17 = vpop.xlane.xlu0 %824 }
 0x2ca   :  { %v843_v18 = vsub.f32 %v811_v44, %v825_v17 }
 0x2cc   :  { %v853_v19 = vmul.f32 1.442695, %v843_v18 }
 0x2cd   :  { %v831_v20 = vpop.xlane.xlu1 %830  ;;  %v828_v21 = vpop.xlane.xlu0 %827 }
 0x2ce   :  { %4443 = vpow2.f32 %v853_v19  ;;  %v845_v22 = vsub.f32 %v813_v53, %v831_v20  ;;  %v844_v23 = vsub.f32 %v812_v48, %v828_v21 }
 0x2cf   :  { %v4440_v24 = vpop.eup %4439 }
 0x2d0   :  { %v857_v25 = vmul.f32 1.442695, %v845_v22  ;;  %v855_v26 = vmul.f32 1.442695, %v844_v23  ;;  %v865_v27 = vsel %vm187_vm2, %v4440_v24, 0.0 }
 0x2d1   :  { %866 = vadd.xlane.f32.xlu1 %v865_v27  ;;  %v837_v28 = vpop.xlane.xlu1 %836  ;;  %v834_v29 = vpop.xlane.xlu0 %833 }
 0x2d2   :  { %4445 = vpow2.f32 %v857_v25  ;;  %v847_v31 = vsub.f32 %v815_v63, %v837_v28  ;;  %v846_v32 = vsub.f32 %v814_v57, %v834_v29 }
 0x2d3   :  { %v4442_v33 = vpop.eup %4441  ;;  %4447 = vpow2.f32 %v855_v26 }
 0x2d4   :  { %v861_v35 = vmul.f32 1.442695, %v847_v31  ;;  %v859_v36 = vmul.f32 1.442695, %v846_v32  ;;  %v868_v37 = vsel %vm187_vm2, %v4442_v33, 0.0 }
 0x2d5   :  { %v906_v38 = vpop.permute.xlu1 %905  ;;  %869 = vadd.xlane.f32.xlu0 %v868_v37  ;;  %v840_v39 = vpop.xlane.xlu0 %839 }
 0x2d6   :  { %4449 = vpow2.f32 %v861_v35  ;;  %v848_v41 = vsub.f32 %v816_v2, %v840_v39  ;;  %4065 = vmatpush3.msra.mxu0 %v906_v38  ;;  %v64_v35 = vld [vmem:[%s5285_s4 + $0x8] sm:$0xff]  ;;  %v65_v39 = vld [vmem:[%s5285_s4 + $0x10] sm:$0xff] }
 0x2d7   :  { %4451 = vpow2.f32 %v859_v36  ;;  %4074 = vmatprep.subr.mxu0 %v4551_v8 }
 0x2d8   :  { %v4444_v43 = vpop.eup %4443  ;;  %v863_v44 = vmul.f32 1.442695, %v848_v41  ;;  %v66_v41 = vld [vmem:[%s5285_s4 + $0x18] sm:$0xff] }
 0x2d9   :  { %v982_v45 = vpop.permute.xlu0 %981  ;;  %v871_v46 = vsel %vm187_vm2, %v4444_v43, 0.0  ;;  %v1058_v60 = vpop.permute.xlu1 %1057 }
 0x2da   :  { %4453 = vpow2.f32 %v863_v44  ;;  %872 = vadd.xlane.f32.xlu1 %v871_v46  ;;  %4070 = vmatpush3.msra.mxu1 %v982_v45 }
 0x2db   :  { %4079 = vmatprep.subr.mxu1 %v4551_v8 }
 0x2dc   :  { %v4446_v48 = vpop.eup %4445 }
 0x2dd   :  { %v4448_v49 = vpop.eup %4447  ;;  %v877_v50 = vsel %vm187_vm2, %v4446_v48, 0.0  ;;  %v1134_v62 = vpop.permute.xlu1 %1133 }
 0x2de   :  { %878 = vadd.xlane.f32.xlu1 %v877_v50  ;;  %v874_v52 = vsel %vm187_vm2, %v4448_v49, 0.0  ;;  %v1210_v0 = vpop.permute.xlu0 %1209 }
 0x2df   :  { %875 = vadd.xlane.f32.xlu0 %v874_v52 }
 0x2e0   :  { %v4450_v53 = vpop.eup %4449 }
 0x2e1   :  { %v4452_v54 = vpop.eup %4451  ;;  %v883_v55 = vsel %vm187_vm2, %v4450_v53, 0.0  ;;  %v1286_v63 = vpop.permute.xlu1 %1285 }
 0x2e2   :  { %884 = vadd.xlane.f32.xlu1 %v883_v55  ;;  %v880_v57 = vsel %vm187_vm2, %v4452_v54, 0.0 }
 0x2e3   :  { %881 = vadd.xlane.f32.xlu0 %v880_v57 }
 0x2e4   :  { %v4824_v58 = vpop.eup %4453 }
 0x2e5   :  { %v886_v59 = vsel %vm187_vm2, %v4824_v58, 0.0 }
 0x2e7   :  { %887 = vadd.xlane.f32.xlu0 %v886_v59 }
 0x2f3   :  { %1437 = vrot.lane.b32.xlu1 %v4679_v11, %s5296_s25 }
 0x2fd   :  { %1361 = vrot.lane.b32.xlu0 %v4685_v13, %s5296_s25  ;;  %s5298_s25 = smov 24  }
 0x35e   :  { %v867_v1 = vpop.xlane.xlu1 %866 }
 0x35f   :  { %4455 = vrcp.f32 %v867_v1 }
 0x362   :  { %v870_v2 = vpop.xlane.xlu0 %869 }
 0x363   :  { %4457 = vrcp.f32 %v870_v2 }
 0x367   :  { %v873_v3 = vpop.xlane.xlu1 %872 }
 0x368   :  { %4459 = vrcp.f32 %v873_v3 }
 0x369   :  { %v4456_v4 = vpop.eup %4455 }
 0x36a   :  { %v897_v6 = vmul.f32 %v4456_v4, %v4440_v24 }
 0x36b   :  { %v879_v9 = vpop.xlane.xlu1 %878 }
 0x36c   :  { %4461 = vrcp.f32 %v879_v9  ;;  %v876_v10 = vpop.xlane.xlu0 %875  ;;  %4067 = vmatmul.mubr.msk.f32.vlgmr.msra.gmra.mrb[6].mxu0 %vm187_vm2, %v897_v6 }
 0x36d   :  { %v4458_v11 = vpop.eup %4457  ;;  %4463 = vrcp.f32 %v876_v10  ;;  %4075 = vmatpush3.msra.mxu0 %v1058_v60  ;;  %4076 = vmatprep.mubr.msk.f32.mxu0 %vm4552_vm1, %v4551_v8 }
 0x36e   :  { %v898_v13 = vmul.f32 %v4458_v11, %v4442_v33  ;;  %4084 = vmatprep.subr.mxu0 %v4551_v8  ;;  %v63_v33 = vld [vmem:[%s5285_s4] sm:$0xff] }
 0x36f   :  { %v885_v12 = vpop.xlane.xlu1 %884  ;;  %v4317_v36 = vpack.c.bf16 %v64_v35, %v63_v33  ;;  %v3792_v11 = vld [vmem:[%s5286_s5] ss:$0 sm:$0xff]  ;;  %v73_v33 = vld [vmem:[%s5289_s8 + $0x18] sm:$0xff] }
 0x370   :  { %4465 = vrcp.f32 %v885_v12  ;;  %v882_v14 = vpop.xlane.xlu0 %881  ;;  %4072 = vmatmul.mubr.msk.f32.vlgmr.msra.gmra.mrb[12].mxu1 %vm187_vm2, %v898_v13 }
 0x371   :  { %4467 = vrcp.f32 %v882_v14  ;;  %4080 = vmatpush3.msra.mxu1 %v1134_v62  ;;  %4081 = vmatprep.mubr.msk.f32.mxu1 %vm4552_vm1, %v4551_v8 }
 0x372   :  { %v4460_v15 = vpop.eup %4459  ;;  %4089 = vmatprep.subr.mxu1 %v4551_v8 }
 0x373   :  { %v899_v16 = vmul.f32 %v4460_v15, %v4444_v43  ;;  %v1438_v27 = vpop.permute.xlu1 %1437  ;;  %v4321_v43 = vpack.c.bf16 %v66_v41, %v65_v39  ;;  %v78_v41 = vld [vmem:[%s5291_s10 + $0x18] sm:$0xff] }
 0x374   :  { %v888_v17 = vpop.xlane.xlu0 %887 }
 0x375   :  { %4469 = vrcp.f32 %v888_v17  ;;  %4077 = vmatmul.mubr.msk.f32.vlgmr.msra.gmra.mrb[8].mxu0 %vm187_vm2, %v899_v16 }
 0x376   :  { %v4462_v18 = vpop.eup %4461  ;;  %4085 = vmatpush3.msra.mxu0 %v1210_v0  ;;  %4086 = vmatprep.mubr.msk.f32.mxu0 %vm4552_vm1, %v4551_v8 }
 0x377   :  { %v4464_v19 = vpop.eup %4463  ;;  %v901_v20 = vmul.f32 %v4462_v18, %v4446_v48  ;;  %4094 = vmatprep.subr.mxu0 %v4551_v8 }
 0x378   :  { %v900_v21 = vmul.f32 %v4464_v19, %v4448_v49  ;;  %v1362_v22 = vpop.permute.xlu0 %1361 }
 0x379   :  { %4087 = vmatmul.mubr.msk.f32.vlgmr.msra.gmra.mrb[10].mxu0 %vm187_vm2, %v901_v20 }
 0x37a   :  { %v4466_v23 = vpop.eup %4465  ;;  %4082 = vmatmul.mubr.msk.f32.vlgmr.msra.gmra.mrb[14].mxu1 %vm187_vm2, %v900_v21  ;;  %4095 = vmatpush3.msra.mxu0 %v1362_v22 }
 0x37b   :  { %v4468_v24 = vpop.eup %4467  ;;  %v903_v25 = vmul.f32 %v4466_v23, %v4450_v53  ;;  %4090 = vmatpush3.msra.mxu1 %v1286_v63  ;;  %4091 = vmatprep.mubr.msk.f32.mxu1 %vm4552_vm1, %v4551_v8 }
 0x37c   :  { %v902_v26 = vmul.f32 %v4468_v24, %v4452_v54  ;;  %4096 = vmatprep.mubr.msk.f32.mxu0 %vm4552_vm1, %v4551_v8  ;;  %4099 = vmatprep.subr.mxu1 %v4551_v8 }
 0x37d   :  { %4097 = vmatmul.mubr.msk.f32.vlgmr.msra.gmra.mrb[12].mxu0 %vm187_vm2, %v903_v25 }
 0x37e   :  { %4092 = vmatmul.mubr.msk.f32.vlgmr.msra.gmra.mrb[16].mxu1 %vm187_vm2, %v902_v26 }
 0x37f   :  { %v4470_v28 = vpop.eup %4469  ;;  %4100 = vmatpush3.msra.mxu1 %v1438_v27  ;;  %4101 = vmatprep.mubr.msk.f32.mxu1 %vm4552_vm1, %v4551_v8 }
 0x380   :  { %v904_v29 = vmul.f32 %v4470_v28, %v4824_v58  ;;  %4318 = vmatprep.subr.bf16.mxu1 %v4317_v36 }
 0x382   :  { %4102 = vmatmul.mubr.msk.f32.vlgmr.msra.gmra.mrb[18].mxu1 %vm187_vm2, %v904_v29  ;;  %v71_v29 = vld [vmem:[%s5289_s8 + $0x8] sm:$0xff] }
 0x383   :  { %4320 = vmatpush3.bf16.msra.mxu1 %v4317_v36  ;;  %v75_v36 = vld [vmem:[%s5291_s10] sm:$0xff] }
 0x384   :  { %4322 = vmatprep.subr.bf16.mxu1 %v4321_v43 }
 0x387   :  { %4324 = vmatpush3.bf16.msra.mxu1 %v4321_v43 }
 0x43f   :  { %v977_v31 = vpop.f32.mrb[6].mxu0 }
 0x440   :  { %v4068_v32 = vpop.f32.mrb[7].mxu0 }
 0x441   :  { %v72_v32 = vld [vmem:[%s5289_s8 + $0x10] sm:$0xff] }
 0x442   :  { %v4329_v35 = vpack.c.bf16 %v73_v33, %v72_v32 }
 0x443   :  { %v1053_v37 = vpop.f32.mrb[12].mxu1 }
 0x444   :  { %v4073_v38 = vpop.f32.mrb[13].mxu1 }
 0x445   :  { %v77_v38 = vld [vmem:[%s5291_s10 + $0x10] sm:$0xff] }
 0x446   :  { %v4337_v43 = vpack.c.bf16 %v78_v41, %v77_v38 }
 0x448   :  { %v1129_v44 = vpop.f32.mrb[8].mxu0 }
 0x449   :  { %v4078_v45 = vpop.f32.mrb[9].mxu0  ;;  %1515 = vrot.lane.b32.xlu0 %v1129_v44, %s5302_s26  ;;  %v79_v44 = vld [vmem:[%s5291_s10 + $0x20] sm:$0xff] }
 0x44a   :  { %v80_v45 = vld [vmem:[%s5291_s10 + $0x28] sm:$0xff] }
 0x44c   :  { %v1281_v46 = vpop.f32.mrb[10].mxu0 }
 0x44d   :  { %v1205_v48 = vpop.f32.mrb[14].mxu1  ;;  %1523 = vrot.lane.b32.xlu0 %v1281_v46, %s5300_s17  ;;  %v4088_v49 = vpop.f32.mrb[11].mxu0  ;;  %v4341_v46 = vpack.c.bf16 %v80_v45, %v79_v44 }
 0x44e   :  { %1517 = vrot.lane.b32.xlu1 %v1205_v48, %s5302_s26  ;;  %v4083_v50 = vpop.f32.mrb[15].mxu1 }
 0x450   :  { %v1433_v52 = vpop.f32.mrb[12].mxu0 }
 0x451   :  { %v1357_v53 = vpop.f32.mrb[16].mxu1  ;;  %1531 = vrot.lane.b32.xlu0 %v1433_v52, %s5298_s25  ;;  %v4098_v54 = vpop.f32.mrb[13].mxu0 }
 0x452   :  { %1525 = vrot.lane.b32.xlu1 %v1357_v53, %s5300_s17  ;;  %v4093_v55 = vpop.f32.mrb[17].mxu1 }
 0x455   :  { %v1509_v57 = vpop.f32.mrb[18].mxu1 }
 0x456   :  { %1533 = vrot.lane.b32.xlu1 %v1509_v57, %s5298_s25  ;;  %v4103_v58 = vpop.f32.mrb[19].mxu1  ;;  %v3795_v57 = vld [vmem:[%s5287_s6] ss:$0 sm:$0xff]  ;;  %s5312_s25 = smov 16  }
 0x4bb   :  { %v1516_v59 = vpop.permute.xlu0 %1515 }
 0x4bc   :  { %v1537_v63 = vsel %vm187_vm2, %v977_v31, %v1516_v59  ;;  %v3796_v59 = vld [vmem:[%s5288_s7] ss:$0 sm:$0xff] }
 0x4bf   :  { %v1524_v60 = vpop.permute.xlu0 %1523 }
 0x4c0   :  { %v1518_v62 = vpop.permute.xlu1 %1517  ;;  %v1540_v0 = vsel %vm1539_vm3, %v1537_v63, %v1524_v60 }
 0x4c1   :  { %v1538_v4 = vsel %vm187_vm2, %v1053_v37, %v1518_v62  ;;  %v76_v37 = vld [vmem:[%s5291_s10 + $0x8] sm:$0xff] }
 0x4c2   :  { %v4333_v39 = vpack.c.bf16 %v76_v37, %v75_v36  ;;  %v3800_v36 = vld [vmem:[%s5292_s11] ss:$0 sm:$0xff] }
 0x4c3   :  { %v1532_v1 = vpop.permute.xlu0 %1531 }
 0x4c4   :  { %v1543_v2 = vsel %vm1542_vm4, %v1540_v0, %v1532_v1  ;;  %v1526_v3 = vpop.permute.xlu1 %1525  ;;  %4334 = vmatprep.subr.bf16.mxu0 %v4333_v39 }
 0x4c5   :  { %4112 = vmatprep.mubr.msk.f32.mxu1 %vm100_vm0, %v1543_v2  ;;  %v1541_v6 = vsel %vm1539_vm3, %v1538_v4, %v1526_v3  ;;  %4336 = vmatpush3.bf16.msra.mxu0 %v4333_v39  ;;  %v81_v3 = vld [vmem:[%s5291_s10 + $0x30] sm:$0xff]  ;;  %v82_v4 = vld [vmem:[%s5291_s10 + $0x38] sm:$0xff] }
 0x4c6   :  { %4338 = vmatprep.subr.bf16.mxu0 %v4337_v43 }
 0x4c8   :  { %v1534_v9 = vpop.permute.xlu1 %1533 }
 0x4c9   :  { %v1544_v10 = vsel %vm1542_vm4, %v1541_v6, %v1534_v9  ;;  %4340 = vmatpush3.bf16.msra.mxu0 %v4337_v43  ;;  %v4345_v6 = vpack.c.bf16 %v82_v4, %v81_v3  ;;  %v83_v9 = vld [vmem:[%s5291_s10 + $0x40] sm:$0xff] }
 0x4ca   :  { %4113 = vmatmul.mubr.msk.f32.vlgmr.msra.gmra.mrb[20].mxu1 %vm100_vm0, %v1544_v10  ;;  %4342 = vmatprep.subr.bf16.mxu0 %v4341_v46  ;;  %v84_v10 = vld [vmem:[%s5291_s10 + $0x48] sm:$0xff] }
 0x4cd   :  { %4344 = vmatpush3.bf16.msra.mxu0 %v4341_v46 }
 0x4ce   :  { %4346 = vmatprep.subr.bf16.mxu0 %v4345_v6 }
 0x4d1   :  { %4348 = vmatpush3.bf16.msra.mxu0 %v4345_v6 }
 0x59d   :  { %v4114_v13 = vpop.f32.mrb[20].mxu1 }
 0x59e   :  { %v1629_v12 = vadd.f32 %v4114_v13, %v3792_v11  ;;  %v1623_v14 = vpop.f32.mrb[21].mxu1  ;;  %v85_v13 = vld [vmem:[%s5291_s10 + $0x50] sm:$0xff] }
 0x59f   :  { %v1624_v15 = vadd.f32 %v3792_v11, %v1623_v14  ;;  %v4349_v11 = vpack.c.bf16 %v84_v10, %v83_v9 }
 0x5a0   :  { %v1633_v16 = vadd.f32 %v1629_v12, %v4666_v7  ;;  %v86_v12 = vld [vmem:[%s5291_s10 + $0x58] sm:$0xff] }
 0x5a1   :  { %v1632_v17 = vadd.f32 %v1624_v15, %v4659_v5  ;;  %v70_v5 = vld [vmem:[%s5289_s8] sm:$0xff]  ;;  %4350 = vmatprep.subr.bf16.mxu0 %v4349_v11  ;;  %v4353_v14 = vpack.c.bf16 %v86_v12, %v85_v13 }
 0x5a2   :  { %v1637_v18 = vsel %vm100_vm0, %v1633_v16, 0.0  ;;  %v4325_v31 = vpack.c.bf16 %v71_v29, %v70_v5  ;;  %4352 = vmatpush3.bf16.msra.mxu0 %v4349_v11  ;;  %v87_v15 = vld [vmem:[%s5291_s10 + $0x60] sm:$0xff] }
 0x5a3   :  { %1638 = vadd.xlane.f32.xlu1 %v1637_v18  ;;  %v1634_v19 = vsel %vm100_vm0, %v1632_v17, 0.0  ;;  %4354 = vmatprep.subr.bf16.mxu0 %v4353_v14  ;;  %v89_v18 = vld [vmem:[%s5291_s10 + $0x70] sm:$0xff]  ;;  %v3801_v12 = vld [vmem:[%s5293_s12] ss:$0 sm:$0xff] }
 0x5a4   :  { %1635 = vadd.xlane.f32.xlu0 %v1634_v19  ;;  %4326 = vmatprep.subr.bf16.mxu1 %v4325_v31  ;;  %v90_v19 = vld [vmem:[%s5291_s10 + $0x78] sm:$0xff] }
 0x5a5   :  { %4328 = vmatpush3.bf16.msra.mxu1 %v4325_v31 }
 0x5a6   :  { %4330 = vmatprep.subr.bf16.mxu1 %v4329_v35  ;;  %4356 = vmatpush3.bf16.msra.mxu0 %v4353_v14 }
 0x5a9   :  { %4332 = vmatpush3.bf16.msra.mxu1 %v4329_v35 }
 0x630   :  { %v1639_v20 = vpop.xlane.xlu1 %1638 }
 0x631   :  { %v1642_v21 = vmul.f32 0.03125, %v1639_v20  ;;  %v1636_v22 = vpop.xlane.xlu0 %1635  ;;  %v4361_v20 = vpack.c.bf16 %v90_v19, %v89_v18 }
 0x632   :  { %v1641_v23 = vmul.f32 0.03125, %v1636_v22 }
 0x633   :  { %v1644_v24 = vsub.f32 %v1633_v16, %v1642_v21  ;;  %v88_v16 = vld [vmem:[%s5291_s10 + $0x68] sm:$0xff]  ;;  %v3797_v21 = vld [vmem:[%s5290_s9] ss:$0 sm:$0xff] }
 0x634   :  { %v1643_v25 = vsub.f32 %v1632_v17, %v1641_v23  ;;  %v4357_v17 = vpack.c.bf16 %v88_v16, %v87_v15 }
 0x635   :  { %v1646_v28 = vmul.f32 %v1644_v24, %v1644_v24 }
 0x636   :  { %v1645_v26 = vmul.f32 %v1643_v25, %v1643_v25  ;;  %4358 = vmatprep.subr.bf16.mxu0 %v4357_v17 }
 0x637   :  { %v1650_v7 = vsel %vm100_vm0, %v1646_v28, 0.0  ;;  %4360 = vmatpush3.bf16.msra.mxu0 %v4357_v17  ;;  %v3802_v17 = vld [vmem:[%s5294_s13] ss:$0 sm:$0xff] }
 0x638   :  { %v1647_v27 = vsel %vm100_vm0, %v1645_v26, 0.0  ;;  %4362 = vmatprep.subr.bf16.mxu0 %v4361_v20 }
 0x639   :  { %1648 = vadd.xlane.f32.xlu0 %v1647_v27 }
 0x63b   :  { %4364 = vmatpush3.bf16.msra.mxu0 %v4361_v20 }
 0x63c   :  { %4202 = vmatprep.subr.mxu0 %v4551_v8 }
 0x63d   :  { %1651 = vadd.xlane.f32.xlu0 %v1650_v7 }
 0x6c6   :  { %v1649_v48 = vpop.xlane.xlu0 %1648 }
 0x6c7   :  { %v1653_v49 = vmul.f32 0.03125, %v1649_v48 }
 0x6c9   :  { %v1655_v50 = vadd.f32 1e-05, %v1653_v49 }
 0x6ca   :  { %v1652_v52 = vpop.xlane.xlu0 %1651 }
 0x6cb   :  { %4471 = vrsqrt.f32 %v1655_v50  ;;  %v1654_v53 = vmul.f32 0.03125, %v1652_v52 }
 0x6cd   :  { %v1656_v54 = vadd.f32 1e-05, %v1654_v53 }
 0x6cf   :  { %4473 = vrsqrt.f32 %v1656_v54 }
 0x6d5   :  { %v4472_v55 = vpop.eup %4471 }
 0x6d6   :  { %v1659_v58 = vmul.f32 %v4472_v55, %v1643_v25 }
 0x6d8   :  { %v1667_v60 = vmul.f32 %v3795_v57, %v1659_v58 }
 0x6d9   :  { %v4474_v62 = vpop.eup %4473 }
 0x6da   :  { %v1660_v63 = vmul.f32 %v4474_v62, %v1644_v24  ;;  %v1675_v0 = vadd.f32 %v3796_v59, %v1667_v60  ;;  %v3803_v60 = vld [vmem:[%s5283_s2 + $0x20] sm:$0xff]  ;;  %v3804_v62 = vld [vmem:[%s5283_s2 + $0x28] sm:$0xff] }
 0x6dc   :  { %v1668_v1 = vmul.f32 %v3795_v57, %v1660_v63  ;;  %4123 = vmatprep.mubr.msk.f32.mxu1 %vm100_vm0, %v1675_v0  ;;  %v4365_v63 = vpack.c.bf16 %v3804_v62, %v3803_v60 }
 0x6de   :  { %v1676_v2 = vadd.f32 %v3796_v59, %v1668_v1  ;;  %v3806_v1 = vld [vmem:[%s5283_s2 + $0x38] sm:$0xff]  ;;  %4366 = vmatprep.subr.bf16.mxu1 %v4365_v63 }
 0x6e0   :  { %4124 = vmatmul.mubr.msk.f32.vlgmr.msra.gmra.mrb[22].mxu1 %vm100_vm0, %v1676_v2 }
 0x6e1   :  { %4368 = vmatpush3.bf16.msra.mxu1 %v4365_v63 }
 0x7b3   :  { %v4125_v22 = vpop.f32.mrb[22].mxu1 }
 0x7b4   :  { %v1761_v23 = vadd.f32 %v4125_v22, %v3797_v21  ;;  %v1755_v24 = vpop.f32.mrb[23].mxu1  ;;  %v3839_v22 = vld [vmem:[%s5284_s3 + $0x1] ss:$0 sm:$0xff]  ;;  %s5308_s3 = smov 56  }
 0x7b5   :  { %v1756_v25 = vadd.f32 %v3797_v21, %v1755_v24 }
 0x7b6   :  { %v1767_v26 = vmul.f32 0.70710677, %v1761_v23  ;;  %v1765_v32 = vmul.f32 0.5, %v1761_v23 }
 0x7b7   :  { %v1766_v27 = vmul.f32 0.70710677, %v1756_v25  ;;  %v1764_v29 = vmul.f32 0.5, %v1756_v25 }
 0x7b8   :  { %4475 = verf.f32 %v1767_v26 }
 0x7b9   :  { %4477 = verf.f32 %v1766_v27 }
 0x7c2   :  { %v4476_v28 = vpop.eup %4475 }
 0x7c3   :  { %v4478_v7 = vpop.eup %4477  ;;  %v1771_v5 = vadd.f32 1.0, %v4476_v28 }
 0x7c4   :  { %v1770_v31 = vadd.f32 1.0, %v4478_v7 }
 0x7c5   :  { %v1773_v35 = vmul.f32 %v1771_v5, %v1765_v32 }
 0x7c6   :  { %v1772_v33 = vmul.f32 %v1770_v31, %v1764_v29 }
 0x7c8   :  { %4158 = vmatprep.mubr.f32.mxu0 %v1772_v33 }
 0x7c9   :  { %4159 = vmatmul.mubr.f32.vlgmr.msra.gmra.mrb[14].mxu0 %v1773_v35 }
 0x7ca   :  { %4204 = vmatprep.mubr.msk.f32.mxu0 %vm4552_vm1, %v4551_v8 }
 0x89c   :  { %v4160_v37 = vpop.f32.mrb[14].mxu0 }
 0x89d   :  { %v1852_v38 = vadd.f32 %v4160_v37, %v3800_v36  ;;  %v1846_v39 = vpop.f32.mrb[15].mxu0 }
 0x89e   :  { %v1847_v41 = vadd.f32 %v3800_v36, %v1846_v39 }
 0x89f   :  { %v1856_v43 = vadd.f32 %v1852_v38, %v1676_v2 }
 0x8a0   :  { %v1855_v44 = vadd.f32 %v1847_v41, %v1675_v0  ;;  %v3805_v0 = vld [vmem:[%s5283_s2 + $0x30] sm:$0xff] }
 0x8a1   :  { %v1860_v45 = vsel %vm100_vm0, %v1856_v43, 0.0  ;;  %v4369_v2 = vpack.c.bf16 %v3806_v1, %v3805_v0 }
 0x8a2   :  { %1861 = vadd.xlane.f32.xlu0 %v1860_v45  ;;  %v1857_v46 = vsel %vm100_vm0, %v1855_v44, 0.0 }
 0x8a3   :  { %1858 = vadd.xlane.f32.xlu1 %v1857_v46  ;;  %4370 = vmatprep.subr.bf16.mxu1 %v4369_v2 }
 0x8a4   :  { %4372 = vmatpush3.bf16.msra.mxu1 %v4369_v2 }
 0x8a5   :  { %4172 = vmatprep.subr.mxu1 %v4551_v8 }
 0x92f   :  { %v1862_v48 = vpop.xlane.xlu0 %1861 }
 0x930   :  { %v1864_v49 = vmul.f32 0.03125, %v1862_v48  ;;  %v1859_v50 = vpop.xlane.xlu1 %1858 }
 0x931   :  { %v1863_v52 = vmul.f32 0.03125, %v1859_v50 }
 0x932   :  { %v1866_v53 = vsub.f32 %v1856_v43, %v1864_v49 }
 0x933   :  { %v1865_v54 = vsub.f32 %v1855_v44, %v1863_v52 }
 0x934   :  { %v1868_v55 = vmul.f32 %v1866_v53, %v1866_v53 }
 0x935   :  { %v1867_v57 = vmul.f32 %v1865_v54, %v1865_v54 }
 0x936   :  { %v1872_v58 = vsel %vm100_vm0, %v1868_v55, 0.0 }
 0x937   :  { %1873 = vadd.xlane.f32.xlu0 %v1872_v58  ;;  %v1869_v59 = vsel %vm100_vm0, %v1867_v57, 0.0 }
 0x938   :  { %1870 = vadd.xlane.f32.xlu1 %v1869_v59 }
 0x9c4   :  { %v1874_v3 = vpop.xlane.xlu0 %1873 }
 0x9c5   :  { %v1876_v4 = vmul.f32 0.03125, %v1874_v3  ;;  %v1871_v6 = vpop.xlane.xlu1 %1870 }
 0x9c6   :  { %v1875_v9 = vmul.f32 0.03125, %v1871_v6 }
 0x9c7   :  { %v1878_v10 = vadd.f32 1e-05, %v1876_v4 }
 0x9c8   :  { %v1877_v11 = vadd.f32 1e-05, %v1875_v9 }
 0x9c9   :  { %4479 = vrsqrt.f32 %v1878_v10 }
 0x9ca   :  { %4481 = vrsqrt.f32 %v1877_v11 }
 0x9d3   :  { %v4480_v13 = vpop.eup %4479 }
 0x9d4   :  { %v4482_v14 = vpop.eup %4481  ;;  %v1882_v15 = vmul.f32 %v4480_v13, %v1866_v53 }
 0x9d5   :  { %v1881_v16 = vmul.f32 %v4482_v14, %v1865_v54 }
 0x9d6   :  { %v1890_v18 = vmul.f32 %v3801_v12, %v1882_v15 }
 0x9d7   :  { %v1889_v19 = vmul.f32 %v3801_v12, %v1881_v16 }
 0x9d8   :  { %v4994_v21 = vadd.f32 %v3802_v17, %v1890_v18 }
 0x9d9   :  { %v4992_v20 = vadd.f32 %v3802_v17, %v1889_v19 }
 0x9db   :  { %4169 = vmatprep.mubr.msk.f32.mxu1 %vm100_vm0, %v4992_v20 }
 0x9dc   :  { %4170 = vmatmul.mubr.msk.f32.vlgmr.msra.gmra.mrb[24].mxu1 %vm100_vm0, %v4994_v21 }
 0x9dd   :  { %4174 = vmatprep.mubr.msk.f32.mxu1 %vm4552_vm1, %v4551_v8 }
 0xaaf   :  { %v4171_v23 = vpop.f32.mrb[24].mxu1 }
 0xab0   :  { %v5005_v24 = vadd.f32 %v4171_v23, %v3839_v22  ;;  %v2025_v25 = vpop.f32.mrb[25].mxu1 }
 0xab1   :  { %v5007_v26 = vadd.f32 %v3839_v22, %v2025_v25 }
 0xab2   :  { %2115 = vrot.lane.b32.xlu0 %v5005_v24, %s4554_s27  ;;  %v2035_v27 = vmul.f32 0.35355338, %v5005_v24 }
 0xab3   :  { %2037 = vrot.lane.b32.xlu1 %v5007_v26, %s4554_s27  ;;  %v2034_v28 = vmul.f32 0.35355338, %v5007_v26  ;;  %s5310_s27 = smov 40  }
 0xab6   :  { %2272 = vrot.lane.b32.xlu0 %v5005_v24, %s4553_s0 }
 0xab7   :  { %2194 = vrot.lane.b32.xlu1 %v5007_v26, %s4553_s0  ;;  %s5309_s0 = smov 48  }
 0xaba   :  { %2350 = vrot.lane.b32.xlu0 %v5007_v26, %s4555_s28 }
 0xabb   :  { %2270 = vrot.lane.b32.xlu1 %v2035_v27, %s4557_s30 }
 0xabe   :  { %2428 = vrot.lane.b32.xlu0 %v5005_v24, %s4555_s28  ;;  %s5311_s28 = smov 8  }
 0xabf   :  { %2192 = vrot.lane.b32.xlu1 %v2034_v28, %s4557_s30 }
 0xac2   :  { %2506 = vrot.lane.b32.xlu0 %v5007_v26, %s4556_s29 }
 0xac3   :  { %2426 = vrot.lane.b32.xlu1 %v2035_v27, %s4558_s15 }
 0xac6   :  { %2504 = vrot.lane.b32.xlu0 %v2034_v28, %s4559_s16 }
 0xac7   :  { %2348 = vrot.lane.b32.xlu1 %v2034_v28, %s4558_s15 }
 0xacb   :  { %2584 = vrot.lane.b32.xlu1 %v5005_v24, %s4556_s29 }
 0xacf   :  { %2582 = vrot.lane.b32.xlu1 %v2035_v27, %s4559_s16 }
 0xb24   :  { %v2116_v7 = vpop.permute.xlu0 %2115 }
 0xb25   :  { %v2038_v5 = vpop.permute.xlu1 %2037 }
 0xb26   :  { %4173 = vmatpush3.xpose.msk.msra.mxu1 %vm187_vm2, %v2038_v5 }
 0xb27   :  { %4177 = vmatprep.subr.mxu1 %v4551_v8 }
 0xb28   :  { %v2273_v29 = vpop.permute.xlu0 %2272 }
 0xb29   :  { %v2195_v31 = vpop.permute.xlu1 %2194  ;;  %4175 = vmatmul.mubr.msk.f32.vlgmr.msra.gmra.mrb[26].mxu1 %vm187_vm2, %v2034_v28 }
 0xb2a   :  { %4178 = vmatpush3.xpose.msk.msra.mxu1 %vm187_vm2, %v2116_v7  ;;  %4179 = vmatprep.mubr.msk.f32.mxu1 %vm4552_vm1, %v4551_v8 }
 0xb2b   :  { %4182 = vmatprep.subr.mxu1 %v4551_v8 }
 0xb2c   :  { %v2351_v32 = vpop.permute.xlu0 %2350 }
 0xb2d   :  { %v2271_v33 = vpop.permute.xlu1 %2270  ;;  %4180 = vmatmul.mubr.msk.f32.vlgmr.msra.gmra.mrb[28].mxu1 %vm187_vm2, %v2035_v27 }
 0xb2e   :  { %4183 = vmatpush3.xpose.msk.msra.mxu1 %vm187_vm2, %v2195_v31  ;;  %4184 = vmatprep.mubr.msk.f32.mxu1 %vm4552_vm1, %v4551_v8 }
 0xb2f   :  { %4187 = vmatprep.subr.mxu1 %v4551_v8 }
 0xb30   :  { %v2429_v35 = vpop.permute.xlu0 %2428 }
 0xb31   :  { %v2193_v36 = vpop.permute.xlu1 %2192 }
 0xb32   :  { %4185 = vmatmul.mubr.msk.f32.vlgmr.msra.gmra.mrb[30].mxu1 %vm187_vm2, %v2193_v36 }
 0xb33   :  { %4188 = vmatpush3.xpose.msk.msra.mxu1 %vm187_vm2, %v2273_v29  ;;  %4189 = vmatprep.mubr.msk.f32.mxu1 %vm4552_vm1, %v4551_v8 }
 0xb34   :  { %v2507_v37 = vpop.permute.xlu0 %2506  ;;  %4192 = vmatprep.subr.mxu1 %v4551_v8 }
 0xb35   :  { %4203 = vmatpush3.xpose.msk.msra.mxu0 %vm187_vm2, %v2507_v37  ;;  %v2427_v38 = vpop.permute.xlu1 %2426 }
 0xb36   :  { %4190 = vmatmul.mubr.msk.f32.vlgmr.msra.gmra.mrb[32].mxu1 %vm187_vm2, %v2271_v33  ;;  %4212 = vmatprep.subr.mxu0 %v4551_v8 }
 0xb37   :  { %4193 = vmatpush3.xpose.msk.msra.mxu1 %vm187_vm2, %v2351_v32  ;;  %4194 = vmatprep.mubr.msk.f32.mxu1 %vm4552_vm1, %v4551_v8 }
 0xb38   :  { %v2505_v39 = vpop.permute.xlu0 %2504  ;;  %4197 = vmatprep.subr.mxu1 %v4551_v8 }
 0xb39   :  { %4205 = vmatmul.mubr.msk.f32.vlgmr.msra.gmra.mrb[16].mxu0 %vm187_vm2, %v2505_v39  ;;  %v2349_v41 = vpop.permute.xlu1 %2348 }
 0xb3a   :  { %4195 = vmatmul.mubr.msk.f32.vlgmr.msra.gmra.mrb[34].mxu1 %vm187_vm2, %v2349_v41  ;;  %4214 = vmatprep.mubr.msk.f32.mxu0 %vm4552_vm1, %v4551_v8 }
 0xb3b   :  { %4198 = vmatpush3.xpose.msk.msra.mxu1 %vm187_vm2, %v2429_v35  ;;  %4199 = vmatprep.mubr.msk.f32.mxu1 %vm4552_vm1, %v4551_v8 }
 0xb3c   :  { %4207 = vmatprep.subr.mxu1 %v4551_v8 }
 0xb3d   :  { %v2585_v43 = vpop.permute.xlu1 %2584 }
 0xb3e   :  { %4200 = vmatmul.mubr.msk.f32.vlgmr.msra.gmra.mrb[36].mxu1 %vm187_vm2, %v2427_v38 }
 0xb3f   :  { %4208 = vmatpush3.xpose.msk.msra.mxu1 %vm187_vm2, %v2585_v43  ;;  %4209 = vmatprep.mubr.msk.f32.mxu1 %vm4552_vm1, %v4551_v8 }
 0xb40   :  { %4217 = vmatprep.subr.mxu1 %v4551_v8 }
 0xb41   :  { %v2583_v44 = vpop.permute.xlu1 %2582 }
 0xb42   :  { %4210 = vmatmul.mubr.msk.f32.vlgmr.msra.gmra.mrb[38].mxu1 %vm187_vm2, %v2583_v44 }
 0xb43   :  { %4219 = vmatprep.mubr.msk.f32.mxu1 %vm4552_vm1, %v4551_v8 }
 0xbfc   :  { %v2110_v45 = vpop.f32.mrb[26].mxu1 }
 0xbfd   :  { %v2660_v46 = vadd.f32 %v2110_v45, %v4750_v30  ;;  %v4176_v48 = vpop.f32.mrb[27].mxu1 }
 0xbff   :  { %v2668_v49 = vsel %vm187_vm2, %v2660_v46, -inf }
 0xc00   :  { %2669 = vmax.xlane.f32.xlu0 %v2668_v49  ;;  %v2188_v50 = vpop.f32.mrb[28].mxu1 }
 0xc01   :  { %v2661_v52 = vadd.f32 %v2188_v50, %v4756_v34  ;;  %v4181_v53 = vpop.f32.mrb[29].mxu1 }
 0xc03   :  { %v2671_v54 = vsel %vm187_vm2, %v2661_v52, -inf }
 0xc04   :  { %2672 = vmax.xlane.f32.xlu1 %v2671_v54 }
 0xc05   :  { %v2266_v55 = vpop.f32.mrb[30].mxu1 }
 0xc06   :  { %v2662_v57 = vadd.f32 %v2266_v55, %v4764_v40  ;;  %v4186_v58 = vpop.f32.mrb[31].mxu1 }
 0xc08   :  { %v2674_v59 = vsel %vm187_vm2, %v2662_v57, -inf }
 0xc09   :  { %2675 = vmax.xlane.f32.xlu0 %v2674_v59  ;;  %v2344_v60 = vpop.f32.mrb[32].mxu1 }
 0xc0a   :  { %v2663_v30 = vadd.f32 %v2344_v60, %v4769_v42  ;;  %v4191_v62 = vpop.f32.mrb[33].mxu1 }
 0xc0c   :  { %v2578_v63 = vpop.f32.mrb[16].mxu0  ;;  %v2677_v0 = vsel %vm187_vm2, %v2663_v30, -inf }
 0xc0d   :  { %v4206_v1 = vpop.f32.mrb[17].mxu0  ;;  %2678 = vmax.xlane.f32.xlu0 %v2677_v0  ;;  %v2422_v34 = vpop.f32.mrb[34].mxu1  ;;  %v2666_v4 = vadd.f32 %v2578_v63, %v4788_v56 }
 0xc0e   :  { %v2664_v2 = vadd.f32 %v2422_v34, %v4775_v47  ;;  %v4196_v3 = vpop.f32.mrb[35].mxu1 }
 0xc0f   :  { %v2686_v42 = vsel %vm187_vm2, %v2666_v4, -inf }
 0xc10   :  { %v2680_v40 = vsel %vm187_vm2, %v2664_v2, -inf }
 0xc11   :  { %2681 = vmax.xlane.f32.xlu1 %v2680_v40  ;;  %v2500_v6 = vpop.f32.mrb[36].mxu1 }
 0xc12   :  { %v2665_v9 = vadd.f32 %v2500_v6, %v4782_v51  ;;  %v4201_v10 = vpop.f32.mrb[37].mxu1 }
 0xc14   :  { %v2683_v11 = vsel %vm187_vm2, %v2665_v9, -inf }
 0xc15   :  { %2687 = vmax.xlane.f32.xlu1 %v2686_v42  ;;  %2684 = vmax.xlane.f32.xlu0 %v2683_v11  ;;  %v2656_v13 = vpop.f32.mrb[38].mxu1 }
 0xc16   :  { %v2667_v12 = vadd.f32 %v2656_v13, %v4796_v61  ;;  %v4211_v47 = vpop.f32.mrb[39].mxu1 }
 0xc18   :  { %v2689_v14 = vsel %vm187_vm2, %v2667_v12, -inf }
 0xc19   :  { %2690 = vmax.xlane.f32.xlu0 %v2689_v14 }
 0xc26   :  { %2756 = vrot.lane.b32.xlu1 %v5007_v26, %s4560_s23 }
 0xc2a   :  { %2908 = vrot.lane.b32.xlu1 %v5007_v26, %s5308_s3 }
 0xc2e   :  { %2984 = vrot.lane.b32.xlu1 %v5005_v24, %s5308_s3 }
 0xc2f   :  { %2832 = vrot.lane.b32.xlu0 %v5005_v24, %s4560_s23 }
 0xc32   :  { %3136 = vrot.lane.b32.xlu1 %v5005_v24, %s5309_s0 }
 0xc33   :  { %3060 = vrot.lane.b32.xlu0 %v5007_v26, %s5309_s0 }
 0xc8d   :  { %v2670_v51 = vpop.xlane.xlu0 %2669 }
 0xc8e   :  { %v2692_v56 = vsub.f32 %v2660_v46, %v2670_v51 }
 0xc90   :  { %v2700_v61 = vmul.f32 1.442695, %v2692_v56 }
 0xc91   :  { %v2673_v15 = vpop.xlane.xlu1 %2672 }
 0xc92   :  { %4483 = vpow2.f32 %v2700_v61  ;;  %v2693_v16 = vsub.f32 %v2661_v52, %v2673_v15 }
 0xc94   :  { %v2702_v17 = vmul.f32 1.442695, %v2693_v16 }
 0xc96   :  { %4485 = vpow2.f32 %v2702_v17  ;;  %v2676_v18 = vpop.xlane.xlu0 %2675 }
 0xc97   :  { %v2694_v5 = vsub.f32 %v2662_v57, %v2676_v18 }
 0xc99   :  { %v2704_v36 = vmul.f32 1.442695, %v2694_v5 }
 0xc9a   :  { %v2679_v19 = vpop.xlane.xlu0 %2678 }
 0xc9b   :  { %v2695_v22 = vsub.f32 %v2663_v30, %v2679_v19 }
 0xc9c   :  { %v4484_v23 = vpop.eup %4483 }
 0xc9d   :  { %v2706_v25 = vmul.f32 1.442695, %v2695_v22  ;;  %v2716_v27 = vsel %vm187_vm2, %v4484_v23, 0.0 }
 0xc9e   :  { %2717 = vadd.xlane.f32.xlu1 %v2716_v27  ;;  %v2682_v28 = vpop.xlane.xlu1 %2681 }
 0xc9f   :  { %4487 = vpow2.f32 %v2706_v25  ;;  %v2696_v37 = vsub.f32 %v2664_v2, %v2682_v28 }
 0xca0   :  { %v5102_v7 = vpop.eup %4485 }
 0xca1   :  { %v2719_v29 = vsel %vm187_vm2, %v5102_v7, 0.0  ;;  %v2708_v46 = vmul.f32 1.442695, %v2696_v37 }
 0xca2   :  { %v2688_v31 = vpop.xlane.xlu1 %2687  ;;  %v2685_v32 = vpop.xlane.xlu0 %2684  ;;  %2720 = vadd.xlane.f32.xlu0 %v2719_v29 }
 0xca3   :  { %v2698_v33 = vsub.f32 %v2666_v4, %v2688_v31  ;;  %v2697_v35 = vsub.f32 %v2665_v9, %v2685_v32  ;;  %v3808_v32 = vld [vmem:[%s5285_s4 + $0x20] sm:$0xff] }
 0xca5   :  { %v2712_v38 = vmul.f32 1.442695, %v2698_v33  ;;  %v2710_v39 = vmul.f32 1.442695, %v2697_v35  ;;  %v3810_v35 = vld [vmem:[%s5285_s4 + $0x30] sm:$0xff] }
 0xca6   :  { %v2757_v41 = vpop.permute.xlu1 %2756  ;;  %v2691_v43 = vpop.xlane.xlu0 %2690 }
 0xca7   :  { %4489 = vpow2.f32 %v2712_v38  ;;  %v2699_v44 = vsub.f32 %v2667_v12, %v2691_v43  ;;  %4213 = vmatpush3.msra.mxu0 %v2757_v41 }
 0xca8   :  { %4491 = vpow2.f32 %v2710_v39  ;;  %4222 = vmatprep.subr.mxu0 %v4551_v8 }
 0xca9   :  { %v4488_v45 = vpop.eup %4487  ;;  %4493 = vpow2.f32 %v2704_v36  ;;  %v2714_v48 = vmul.f32 1.442695, %v2699_v44  ;;  %v3811_v36 = vld [vmem:[%s5285_s4 + $0x38] sm:$0xff] }
 0xcaa   :  { %v2833_v49 = vpop.permute.xlu0 %2832  ;;  %v2725_v50 = vsel %vm187_vm2, %v4488_v45, 0.0  ;;  %v2909_v63 = vpop.permute.xlu1 %2908  ;;  %v4377_v37 = vpack.c.bf16 %v3811_v36, %v3810_v35 }
 0xcab   :  { %4495 = vpow2.f32 %v2714_v48  ;;  %2726 = vadd.xlane.f32.xlu0 %v2725_v50  ;;  %4218 = vmatpush3.msra.mxu1 %v2833_v49 }
 0xcac   :  { %4227 = vmatprep.subr.mxu1 %v4551_v8  ;;  %4497 = vpow2.f32 %v2708_v46 }
 0xcae   :  { %v2985_v0 = vpop.permute.xlu1 %2984  ;;  %v3061_v34 = vpop.permute.xlu0 %3060 }
 0xcb1   :  { %v5109_v52 = vpop.eup %4489 }
 0xcb2   :  { %v4492_v53 = vpop.eup %4491  ;;  %v2734_v54 = vsel %vm187_vm2, %v5109_v52, 0.0  ;;  %v3137_v1 = vpop.permute.xlu1 %3136 }
 0xcb3   :  { %v4494_v55 = vpop.eup %4493  ;;  %2735 = vadd.xlane.f32.xlu1 %v2734_v54  ;;  %v2731_v57 = vsel %vm187_vm2, %v4492_v53, 0.0 }
 0xcb4   :  { %2732 = vadd.xlane.f32.xlu0 %v2731_v57  ;;  %v2722_v59 = vsel %vm187_vm2, %v4494_v55, 0.0 }
 0xcb5   :  { %v4496_v58 = vpop.eup %4495 }
 0xcb6   :  { %v2737_v60 = vsel %vm187_vm2, %v4496_v58, 0.0  ;;  %v4498_v30 = vpop.eup %4497 }
 0xcb7   :  { %2723 = vadd.xlane.f32.xlu1 %v2722_v59  ;;  %v2728_v62 = vsel %vm187_vm2, %v4498_v30, 0.0 }
 0xcb8   :  { %2738 = vadd.xlane.f32.xlu0 %v2737_v60 }
 0xcbb   :  { %2729 = vadd.xlane.f32.xlu1 %v2728_v62 }
 0xccc   :  { %3288 = vrot.lane.b32.xlu1 %v5005_v24, %s5310_s27 }
 0xcce   :  { %3212 = vrot.lane.b32.xlu0 %v5007_v26, %s5310_s27 }
 0xd2b   :  { %v2718_v2 = vpop.xlane.xlu1 %2717 }
 0xd2c   :  { %4499 = vrcp.f32 %v2718_v2 }
 0xd2f   :  { %v2721_v3 = vpop.xlane.xlu0 %2720 }
 0xd30   :  { %4501 = vrcp.f32 %v2721_v3 }
 0xd36   :  { %v4500_v4 = vpop.eup %4499 }
 0xd37   :  { %v2748_v40 = vmul.f32 %v4500_v4, %v4484_v23 }
 0xd38   :  { %v2727_v6 = vpop.xlane.xlu0 %2726 }
 0xd39   :  { %4503 = vrcp.f32 %v2727_v6  ;;  %4215 = vmatmul.mubr.msk.f32.vlgmr.msra.gmra.mrb[18].mxu0 %vm187_vm2, %v2748_v40 }
 0xd3a   :  { %v4502_v9 = vpop.eup %4501  ;;  %4223 = vmatpush3.msra.mxu0 %v2909_v63  ;;  %4224 = vmatprep.mubr.msk.f32.mxu0 %vm4552_vm1, %v4551_v8 }
 0xd3b   :  { %v2749_v24 = vmul.f32 %v4502_v9, %v5102_v7  ;;  %4232 = vmatprep.subr.mxu0 %v4551_v8 }
 0xd3d   :  { %4220 = vmatmul.mubr.msk.f32.vlgmr.msra.gmra.mrb[40].mxu1 %vm187_vm2, %v2749_v24 }
 0xd3e   :  { %4228 = vmatpush3.msra.mxu1 %v2985_v0  ;;  %4229 = vmatprep.mubr.msk.f32.mxu1 %vm4552_vm1, %v4551_v8 }
 0xd3f   :  { %4237 = vmatprep.subr.mxu1 %v4551_v8 }
 0xd40   :  { %v2736_v26 = vpop.xlane.xlu1 %2735 }
 0xd41   :  { %v2733_v10 = vpop.xlane.xlu0 %2732 }
 0xd42   :  { %4505 = vrcp.f32 %v2733_v10 }
 0xd43   :  { %v4504_v42 = vpop.eup %4503 }
 0xd44   :  { %v2751_v11 = vmul.f32 %v4504_v42, %v4488_v45  ;;  %v2724_v13 = vpop.xlane.xlu1 %2723 }
 0xd45   :  { %4507 = vrcp.f32 %v2724_v13  ;;  %v2739_v12 = vpop.xlane.xlu0 %2738 }
 0xd46   :  { %4509 = vrcp.f32 %v2739_v12  ;;  %4230 = vmatmul.mubr.msk.f32.vlgmr.msra.gmra.mrb[42].mxu1 %vm187_vm2, %v2751_v11 }
 0xd47   :  { %4238 = vmatpush3.msra.mxu1 %v3137_v1  ;;  %4239 = vmatprep.mubr.msk.f32.mxu1 %vm4552_vm1, %v4551_v8  ;;  %v3866_v1 = vld [vmem:[%s5286_s5 + $0x1] ss:$0 sm:$0xff] }
 0xd48   :  { %v2730_v47 = vpop.xlane.xlu1 %2729  ;;  %4247 = vmatprep.subr.mxu1 %v4551_v8 }
 0xd49   :  { %4511 = vrcp.f32 %v2730_v47  ;;  %v3213_v23 = vpop.permute.xlu0 %3212 }
 0xd4a   :  { %4513 = vrcp.f32 %v2736_v26 }
 0xd4c   :  { %v4506_v14 = vpop.eup %4505  ;;  %v3289_v56 = vpop.permute.xlu1 %3288 }
 0xd4d   :  { %v2753_v51 = vmul.f32 %v4506_v14, %v4492_v53 }
 0xd4f   :  { %v4508_v61 = vpop.eup %4507  ;;  %4240 = vmatmul.mubr.msk.f32.vlgmr.msra.gmra.mrb[44].mxu1 %vm187_vm2, %v2753_v51 }
 0xd50   :  { %v4510_v15 = vpop.eup %4509  ;;  %v2750_v16 = vmul.f32 %v4508_v61, %v4494_v55  ;;  %4248 = vmatpush3.msra.mxu1 %v3289_v56  ;;  %4249 = vmatprep.mubr.msk.f32.mxu1 %vm4552_vm1, %v4551_v8  ;;  %v3816_v56 = vld [vmem:[%s5289_s8 + $0x28] sm:$0xff] }
 0xd51   :  { %v2755_v17 = vmul.f32 %v4510_v15, %v4496_v58  ;;  %v3817_v15 = vld [vmem:[%s5289_s8 + $0x30] sm:$0xff] }
 0xd52   :  { %4225 = vmatmul.mubr.msk.f32.vlgmr.msra.gmra.mrb[20].mxu0 %vm187_vm2, %v2750_v16  ;;  %v3818_v16 = vld [vmem:[%s5289_s8 + $0x38] sm:$0xff] }
 0xd53   :  { %v4512_v18 = vpop.eup %4511  ;;  %4233 = vmatpush3.msra.mxu0 %v3061_v34  ;;  %4250 = vmatmul.mubr.msk.f32.vlgmr.msra.gmra.mrb[46].mxu1 %vm187_vm2, %v2755_v17  ;;  %v4385_v17 = vpack.c.bf16 %v3818_v16, %v3817_v15 }
 0xd54   :  { %v2752_v19 = vmul.f32 %v4512_v18, %v4498_v30  ;;  %4234 = vmatprep.mubr.msk.f32.mxu0 %vm4552_vm1, %v4551_v8  ;;  %4242 = vmatprep.subr.mxu0 %v4551_v8  ;;  %v4514_v22 = vpop.eup %4513  ;;  %v3820_v18 = vld [vmem:[%s5291_s10 + $0x80] sm:$0xff] }
 0xd55   :  { %v2754_v25 = vmul.f32 %v4514_v22, %v5109_v52  ;;  %v3822_v22 = vld [vmem:[%s5291_s10 + $0x90] sm:$0xff] }
 0xd56   :  { %4235 = vmatmul.mubr.msk.f32.vlgmr.msra.gmra.mrb[22].mxu0 %vm187_vm2, %v2752_v19  ;;  %v3821_v19 = vld [vmem:[%s5291_s10 + $0x88] sm:$0xff] }
 0xd57   :  { %4243 = vmatpush3.msra.mxu0 %v3213_v23  ;;  %4244 = vmatprep.mubr.msk.f32.mxu0 %vm4552_vm1, %v4551_v8  ;;  %v3809_v8 = vld [vmem:[%s5285_s4 + $0x28] sm:$0xff]  ;;  %v4389_v23 = vpack.c.bf16 %v3821_v19, %v3820_v18 }
 0xd58   :  { %v4373_v33 = vpack.c.bf16 %v3809_v8, %v3808_v32 }
 0xd5a   :  { %4245 = vmatmul.mubr.msk.f32.vlgmr.msra.gmra.mrb[24].mxu0 %vm187_vm2, %v2754_v25  ;;  %4374 = vmatprep.subr.bf16.mxu0 %v4373_v33  ;;  %v3823_v25 = vld [vmem:[%s5291_s10 + $0x98] sm:$0xff] }
 0xd5b   :  { %4376 = vmatpush3.bf16.msra.mxu0 %v4373_v33 }
 0xd5c   :  { %4378 = vmatprep.subr.bf16.mxu0 %v4377_v37 }
 0xd5f   :  { %4380 = vmatpush3.bf16.msra.mxu0 %v4377_v37  ;;  %v3869_v37 = vld [vmem:[%s5287_s6 + $0x1] ss:$0 sm:$0xff]  ;;  %s3754_s6 = sshll.u32 %s4567_s20, 4  ;;  %s3755_s6 = int_to_ptr.vmem [resolvable:$true] %s3754_s6 }
 0xd60   :  { %4390 = vmatprep.subr.bf16.mxu0 %v4389_v23  ;;  %s4527_s21 = scalar_lea.vmem %s3755_s6, 256  ;;  %p4532_p1 = scmp.lt.s32.totalorder %s3755_s6, %s3755_s6 }
 0xd61   :  { %p4528_p0 = scmp.ne.s32.totalorder %s3755_s6, %s4527_s21  ;;  %p4533_p2 = scmp.lt.s32.totalorder %s4527_s21, %s4527_s21 }
 0xd63   :  { %p4534_p3 = por %p4533_p2, %p4532_p1 }
 0xd65   :  { %p4535_p4 = pnand %p4534_p3, %p4528_p0 }
 0xe0c   :  { %v2828_v27 = vpop.f32.mrb[18].mxu0 }
 0xe0d   :  { %v4216_v28 = vpop.f32.mrb[19].mxu0 }
 0xe0e   :  { %v3824_v28 = vld [vmem:[%s5291_s10 + $0xa0] sm:$0xff] }
 0xe10   :  { %v2904_v7 = vpop.f32.mrb[40].mxu1 }
 0xe11   :  { %v4221_v5 = vpop.f32.mrb[41].mxu1 }
 0xe19   :  { %v3056_v29 = vpop.f32.mrb[42].mxu1 }
 0xe1a   :  { %3368 = vrot.lane.b32.xlu1 %v3056_v29, %s5311_s28  ;;  %v4231_v31 = vpop.f32.mrb[43].mxu1 }
 0xe22   :  { %v3208_v38 = vpop.f32.mrb[44].mxu1 }
 0xe23   :  { %3376 = vrot.lane.b32.xlu1 %v3208_v38, %s5312_s25  ;;  %v4241_v39 = vpop.f32.mrb[45].mxu1 }
 0xe24   :  { %v3870_v39 = vld [vmem:[%s5288_s7 + $0x1] ss:$0 sm:$0xff] }
 0xe25   :  { %v2980_v41 = vpop.f32.mrb[20].mxu0 }
 0xe26   :  { %v3360_v43 = vpop.f32.mrb[46].mxu1  ;;  %v4226_v44 = vpop.f32.mrb[21].mxu0  ;;  %3366 = vrot.lane.b32.xlu0 %v2980_v41, %s5311_s28 }
 0xe27   :  { %3384 = vrot.lane.b32.xlu1 %v3360_v43, %s5313_s19  ;;  %v4251_v45 = vpop.f32.mrb[47].mxu1 }
 0xe29   :  { %v3132_v46 = vpop.f32.mrb[22].mxu0 }
 0xe2a   :  { %3374 = vrot.lane.b32.xlu0 %v3132_v46, %s5312_s25  ;;  %v4236_v48 = vpop.f32.mrb[23].mxu0 }
 0xe2d   :  { %v3284_v49 = vpop.f32.mrb[24].mxu0 }
 0xe2e   :  { %3382 = vrot.lane.b32.xlu0 %v3284_v49, %s5313_s19  ;;  %v4246_v50 = vpop.f32.mrb[25].mxu0  ;;  %v3826_v49 = vld [vmem:[%s5291_s10 + $0xb0] sm:$0xff] }
 0xe2f   :  { %v3827_v50 = vld [vmem:[%s5291_s10 + $0xb8] sm:$0xff] }
 0xe8c   :  { %v3369_v52 = vpop.permute.xlu1 %3368 }
 0xe8d   :  { %v3389_v59 = vsel %vm187_vm2, %v2904_v7, %v3369_v52  ;;  %v3825_v7 = vld [vmem:[%s5291_s10 + $0xa8] sm:$0xff]  ;;  %v4401_v52 = vpack.c.bf16 %v3827_v50, %v3826_v49 }
 0xe8e   :  { %v4397_v5 = vpack.c.bf16 %v3825_v7, %v3824_v28 }
 0xe95   :  { %v3377_v54 = vpop.permute.xlu1 %3376 }
 0xe96   :  { %v3391_v62 = vsel %vm1539_vm3, %v3389_v59, %v3377_v54  ;;  %v3829_v54 = vld [vmem:[%s5291_s10 + $0xc8] sm:$0xff] }
 0xe98   :  { %v3367_v53 = vpop.permute.xlu0 %3366 }
 0xe99   :  { %v3388_v57 = vsel %vm187_vm2, %v2828_v27, %v3367_v53  ;;  %v3385_v58 = vpop.permute.xlu1 %3384  ;;  %v4393_v27 = vpack.c.bf16 %v3823_v25, %v3822_v22  ;;  %v3828_v53 = vld [vmem:[%s5291_s10 + $0xc0] sm:$0xff] }
 0xe9a   :  { %v3393_v0 = vsel %vm1542_vm4, %v3391_v62, %v3385_v58  ;;  %v3831_v58 = vld [vmem:[%s5291_s10 + $0xd8] sm:$0xff] }
 0xe9c   :  { %v3375_v55 = vpop.permute.xlu0 %3374 }
 0xe9d   :  { %v3390_v60 = vsel %vm1539_vm3, %v3388_v57, %v3375_v55  ;;  %v4405_v55 = vpack.c.bf16 %v3829_v54, %v3828_v53  ;;  %v3830_v57 = vld [vmem:[%s5291_s10 + $0xd0] sm:$0xff] }
 0xe9e   :  { %v4409_v59 = vpack.c.bf16 %v3831_v58, %v3830_v57 }
 0xea0   :  { %v3383_v30 = vpop.permute.xlu0 %3382 }
 0xea1   :  { %v3392_v63 = vsel %vm1542_vm4, %v3390_v60, %v3383_v30  ;;  %v3832_v60 = vld [vmem:[%s5291_s10 + $0xe0] sm:$0xff]  ;;  %v3833_v30 = vld [vmem:[%s5291_s10 + $0xe8] sm:$0xff] }
 0xea2   :  { %4260 = vmatprep.mubr.msk.f32.mxu0 %vm100_vm0, %v3392_v63  ;;  %v4413_v62 = vpack.c.bf16 %v3833_v30, %v3832_v60  ;;  %v3834_v63 = vld [vmem:[%s5291_s10 + $0xf0] sm:$0xff] }
 0xea3   :  { %4261 = vmatmul.mubr.msk.f32.vlgmr.msra.gmra.mrb[26].mxu0 %vm100_vm0, %v3393_v0  ;;  %v3835_v0 = vld [vmem:[%s5291_s10 + $0xf8] sm:$0xff] }
 0xea4   :  { %4392 = vmatpush3.bf16.msra.mxu0 %v4389_v23 }
 0xea5   :  { %4394 = vmatprep.subr.bf16.mxu0 %v4393_v27 }
 0xea8   :  { %4396 = vmatpush3.bf16.msra.mxu0 %v4393_v27 }
 0xea9   :  { %4398 = vmatprep.subr.bf16.mxu0 %v4397_v5 }
 0xeac   :  { %4400 = vmatpush3.bf16.msra.mxu0 %v4397_v5 }
 0xead   :  { %4402 = vmatprep.subr.bf16.mxu0 %v4401_v52 }
 0xeb0   :  { %4404 = vmatpush3.bf16.msra.mxu0 %v4401_v52 }
 0xeb1   :  { %4406 = vmatprep.subr.bf16.mxu0 %v4405_v55 }
 0xeb4   :  { %4408 = vmatpush3.bf16.msra.mxu0 %v4405_v55 }
 0xeb5   :  { %4410 = vmatprep.subr.bf16.mxu0 %v4409_v59 }
 0xeb8   :  { %4412 = vmatpush3.bf16.msra.mxu0 %v4409_v59 }
 0xeb9   :  { %4414 = vmatprep.subr.bf16.mxu0 %v4413_v62 }
 0xebc   :  { %4416 = vmatpush3.bf16.msra.mxu0 %v4413_v62 }
 0xf76   :  { %v4262_v34 = vpop.f32.mrb[26].mxu0 }
 0xf77   :  { %v3478_v2 = vadd.f32 %v4262_v34, %v3866_v1  ;;  %v3472_v3 = vpop.f32.mrb[27].mxu0  ;;  %v3871_v34 = vld [vmem:[%s5290_s9 + $0x1] ss:$0 sm:$0xff] }
 0xf78   :  { %v3473_v4 = vadd.f32 %v3866_v1, %v3472_v3  ;;  %v4417_v1 = vpack.c.bf16 %v3835_v0, %v3834_v63 }
 0xf79   :  { %v3482_v40 = vadd.f32 %v3478_v2, %v4994_v21 }
 0xf7a   :  { %v3481_v6 = vadd.f32 %v3473_v4, %v4992_v20  ;;  %v3815_v20 = vld [vmem:[%s5289_s8 + $0x20] sm:$0xff]  ;;  %4418 = vmatprep.subr.bf16.mxu0 %v4417_v1 }
 0xf7b   :  { %v3486_v9 = vsel %vm100_vm0, %v3482_v40, 0.0  ;;  %v4381_v61 = vpack.c.bf16 %v3816_v56, %v3815_v20  ;;  %4420 = vmatpush3.bf16.msra.mxu0 %v4417_v1 }
 0xf7c   :  { %3487 = vadd.xlane.f32.xlu1 %v3486_v9  ;;  %v3483_v24 = vsel %vm100_vm0, %v3481_v6, 0.0 }
 0xf7d   :  { %3484 = vadd.xlane.f32.xlu0 %v3483_v24  ;;  %4382 = vmatprep.subr.bf16.mxu1 %v4381_v61 }
 0xf7e   :  { %4384 = vmatpush3.bf16.msra.mxu1 %v4381_v61 }
 0xf7f   :  { %4386 = vmatprep.subr.bf16.mxu1 %v4385_v17 }
 0xf82   :  { %4388 = vmatpush3.bf16.msra.mxu1 %v4385_v17 }
0x1009   :  { %v3488_v26 = vpop.xlane.xlu1 %3487 }
0x100a   :  { %v3490_v10 = vmul.f32 0.03125, %v3488_v26  ;;  %v3485_v42 = vpop.xlane.xlu0 %3484 }
0x100b   :  { %v3489_v11 = vmul.f32 0.03125, %v3485_v42 }
0x100c   :  { %v3492_v13 = vsub.f32 %v3482_v40, %v3490_v10 }
0x100d   :  { %v3491_v12 = vsub.f32 %v3481_v6, %v3489_v11 }
0x100e   :  { %v3494_v51 = vmul.f32 %v3492_v13, %v3492_v13 }
0x100f   :  { %v3493_v47 = vmul.f32 %v3491_v12, %v3491_v12 }
0x1010   :  { %v3498_v21 = vsel %vm100_vm0, %v3494_v51, 0.0 }
0x1011   :  { %v3495_v14 = vsel %vm100_vm0, %v3493_v47, 0.0 }
0x1012   :  { %3496 = vadd.xlane.f32.xlu0 %v3495_v14  ;;  %v3874_v14 = vld [vmem:[%s5292_s11 + $0x1] ss:$0 sm:$0xff] }
0x1016   :  { %3499 = vadd.xlane.f32.xlu0 %v3498_v21 }
0x109f   :  { %v3497_v29 = vpop.xlane.xlu0 %3496 }
0x10a0   :  { %v3501_v31 = vmul.f32 0.03125, %v3497_v29 }
0x10a2   :  { %v3503_v32 = vadd.f32 1e-05, %v3501_v31 }
0x10a3   :  { %v3500_v8 = vpop.xlane.xlu0 %3499 }
0x10a4   :  { %4515 = vrsqrt.f32 %v3503_v32  ;;  %v3502_v33 = vmul.f32 0.03125, %v3500_v8 }
0x10a6   :  { %v3504_v35 = vadd.f32 1e-05, %v3502_v33 }
0x10a8   :  { %4517 = vrsqrt.f32 %v3504_v35 }
0x10ae   :  { %v4516_v36 = vpop.eup %4515 }
0x10af   :  { %v3507_v38 = vmul.f32 %v4516_v36, %v3491_v12 }
0x10b1   :  { %v3515_v41 = vmul.f32 %v3869_v37, %v3507_v38  ;;  %v3875_v38 = vld [vmem:[%s5293_s12 + $0x1] ss:$0 sm:$0xff] }
0x10b2   :  { %v4518_v43 = vpop.eup %4517 }
0x10b3   :  { %v3508_v44 = vmul.f32 %v4518_v43, %v3492_v13  ;;  %v3523_v45 = vadd.f32 %v3870_v39, %v3515_v41 }
0x10b5   :  { %v3516_v46 = vmul.f32 %v3869_v37, %v3508_v44  ;;  %4271 = vmatprep.mubr.msk.f32.mxu1 %vm100_vm0, %v3523_v45  ;;  %v3876_v44 = vld [vmem:[%s5294_s13 + $0x1] ss:$0 sm:$0xff] }
0x10b7   :  { %v3524_v48 = vadd.f32 %v3870_v39, %v3516_v46 }
0x10b9   :  { %4272 = vmatmul.mubr.msk.f32.vlgmr.msra.gmra.mrb[48].mxu1 %vm100_vm0, %v3524_v48 }
0x118c   :  { %v4273_v2 = vpop.f32.mrb[48].mxu1 }
0x118d   :  { %v3609_v3 = vadd.f32 %v4273_v2, %v3871_v34  ;;  %v3603_v4 = vpop.f32.mrb[49].mxu1 }
0x118e   :  { %v3604_v40 = vadd.f32 %v3871_v34, %v3603_v4 }
0x118f   :  { %v3615_v6 = vmul.f32 0.70710677, %v3609_v3  ;;  %v3613_v13 = vmul.f32 0.5, %v3609_v3 }
0x1190   :  { %v3614_v9 = vmul.f32 0.70710677, %v3604_v40  ;;  %v3612_v42 = vmul.f32 0.5, %v3604_v40 }
0x1191   :  { %4519 = verf.f32 %v3615_v6 }
0x1192   :  { %4521 = verf.f32 %v3614_v9 }
0x119b   :  { %v4520_v24 = vpop.eup %4519 }
0x119c   :  { %v4522_v26 = vpop.eup %4521  ;;  %v3619_v10 = vadd.f32 1.0, %v4520_v24 }
0x119d   :  { %v3618_v11 = vadd.f32 1.0, %v4522_v26 }
0x119e   :  { %v3621_v47 = vmul.f32 %v3619_v10, %v3613_v13 }
0x119f   :  { %v3620_v12 = vmul.f32 %v3618_v11, %v3612_v42 }
0x11a1   :  { %4306 = vmatprep.mubr.f32.mxu0 %v3620_v12 }
0x11a2   :  { %4307 = vmatmul.mubr.f32.vlgmr.msra.gmra.mrb[28].mxu0 %v3621_v47 }
0x1275   :  { %v4308_v51 = vpop.f32.mrb[28].mxu0 }
0x1276   :  { %v3700_v21 = vadd.f32 %v4308_v51, %v3874_v14  ;;  %v3694_v20 = vpop.f32.mrb[29].mxu0 }
0x1277   :  { %v3695_v56 = vadd.f32 %v3874_v14, %v3694_v20 }
0x1278   :  { %v3704_v61 = vadd.f32 %v3700_v21, %v3524_v48 }
0x1279   :  { %v3703_v15 = vadd.f32 %v3695_v56, %v3523_v45 }
0x127a   :  { %v3708_v16 = vsel %vm100_vm0, %v3704_v61, 0.0 }
0x127b   :  { %3709 = vadd.xlane.f32.xlu0 %v3708_v16  ;;  %v3705_v17 = vsel %vm100_vm0, %v3703_v15, 0.0 }
0x127c   :  { %3706 = vadd.xlane.f32.xlu1 %v3705_v17 }
0x1308   :  { %v3710_v18 = vpop.xlane.xlu0 %3709 }
0x1309   :  { %v3712_v19 = vmul.f32 0.03125, %v3710_v18  ;;  %v3707_v22 = vpop.xlane.xlu1 %3706 }
0x130a   :  { %v3711_v23 = vmul.f32 0.03125, %v3707_v22 }
0x130b   :  { %v3714_v25 = vsub.f32 %v3704_v61, %v3712_v19 }
0x130c   :  { %v3713_v27 = vsub.f32 %v3703_v15, %v3711_v23 }
0x130d   :  { %v3716_v28 = vmul.f32 %v3714_v25, %v3714_v25 }
0x130e   :  { %v3715_v7 = vmul.f32 %v3713_v27, %v3713_v27 }
0x130f   :  { %v3720_v5 = vsel %vm100_vm0, %v3716_v28, 0.0 }
0x1310   :  { %3721 = vadd.xlane.f32.xlu0 %v3720_v5  ;;  %v3717_v29 = vsel %vm100_vm0, %v3715_v7, 0.0 }
0x1311   :  { %3718 = vadd.xlane.f32.xlu1 %v3717_v29 }
0x139d   :  { %v3722_v31 = vpop.xlane.xlu0 %3721 }
0x139e   :  { %v3724_v32 = vmul.f32 0.03125, %v3722_v31  ;;  %v3719_v8 = vpop.xlane.xlu1 %3718 }
0x139f   :  { %v3723_v33 = vmul.f32 0.03125, %v3719_v8 }
0x13a0   :  { %v3726_v35 = vadd.f32 1e-05, %v3724_v32 }
0x13a1   :  { %v3725_v36 = vadd.f32 1e-05, %v3723_v33 }
0x13a2   :  { %4523 = vrsqrt.f32 %v3726_v35 }
0x13a3   :  { %4525 = vrsqrt.f32 %v3725_v36 }
0x13ac   :  { %v4524_v37 = vpop.eup %4523 }
0x13ad   :  { %v4526_v39 = vpop.eup %4525  ;;  %v3730_v41 = vmul.f32 %v4524_v37, %v3714_v25 }
0x13ae   :  { %v3729_v43 = vmul.f32 %v4526_v39, %v3713_v27 }
0x13af   :  { %v3738_v45 = vmul.f32 %v3875_v38, %v3730_v41 }
0x13b0   :  { %v3737_v46 = vmul.f32 %v3875_v38, %v3729_v43 }
0x13b1   :  { %v3746_v48 = vadd.f32 %v3876_v44, %v3738_v45 }
0x13b2   :  { %v3745_v49 = vadd.f32 %v3876_v44, %v3737_v46 }
0x13b3   :  { %3748 = vst.msk [vmem:[#allocation2 + $0x8] sm:$0xff] %vm100_vm0, %v3746_v48 }
0x13b4   :  { %3747 = vst.msk [vmem:[#allocation2] sm:$0xff] %vm100_vm0, %v3745_v49 }
0x13b5   :  { %4538 = shalt.err (!%p4535_p4)
}
0x13b6   :  { %s4539_s7 = scalar_lea.hbm %s5295_s14, 256 }
0x13b7   :  { %p4540_p5 = scmp.ne.s32.totalorder %s5295_s14, %s4539_s7  ;;  %p4543_p6 = scmp.lt.u32.totalorder %s4539_s7, %s5295_s14 }
0x13b9   :  { %p4545_p7 = pnand %p4543_p6, %p4540_p5 }
0x13bb   :  { %4548 = shalt.err (!%p4545_p7)
}
0x13bc   :  { %s4568_s29 = smov 128  }
0x13bd   :  { %3760 = dma.vmem_to_hbm [thread:$0]  %s3755_s6, 256, %s5295_s14, [#allocation3], %s4568_s29, %s4568_s29, %s5311_s28  }
0x13be   :  { %4549 = dma.done.wait [#allocation3], 256  }
0x13bf   :  { %4550 = vsyncadd [#allocation3], 4294967040 }
0x13c0   :  { %3764 = vsyncpa [#allocation3], 1 }

</bundles_post_ra>
